<compile_context>
chip_gen: v6e
topology: v6e:2x2x1
jax: 0.10.0
libtpu: 0.0.40
codegen_flags: <defaults>
</compile_context>

<pallas_src>
from functools import partial

import numpy as np
import jax
import jax.numpy as jnp
from jax.experimental import pallas as pl
from jax.experimental.pallas import tpu as pltpu

# ----------------------------- config (small) -------------------------------
VOCAB = 50          # config.vocab_size
EMB = 16            # config.embedding_output
NUM_FILTERS = 32    # config.num_of_filters
WINDOW = 3          # config.window_size
HIDDEN = 32         # config.hidden_size
OUTPUT = 1          # config.output_size
MAX_NUM_SENT = 4    # config.max_num_sent
SEQ_LEN = 16        # tokens per sentence
NUM_SENT = (3, 4)   # sentences per essay (batch of essays B = 2), static
N_SENT = sum(NUM_SENT)
BATCH = len(NUM_SENT)


# ----------------------- single fused forward kernel -------------------------
def fused_forward_kernel(ids_ref, mask_ref, sel_ref, emb_ref, cw_ref, cb_ref,
                         a0w_ref, a0b_ref, wih_ref, whh_ref, lb_ref,
                         a1w_ref, a1b_ref, ow_ref, ob_ref, o_ref,
                         *, N, L, E, V, F, W, B, S, H):
    f32 = jnp.float32
    NL = N * L

    # ---- e0: embedding lookup as one-hot(ids) @ table (MXU, no XLA gather) --
    ids = ids_ref[...]                                            # (N*L, 1) int32
    one_hot = (ids == jax.lax.broadcasted_iota(jnp.int32, (NL, V), 1)).astype(f32)
    e0 = jnp.dot(one_hot, emb_ref[...], preferred_element_type=f32)   # (N*L, E)

    # ---- c0: Conv1d(E->F, window=W, padding='same') + tanh ------------------
    # One matmul per tap over the flat activations; side taps are rolled along
    # sublanes into place and cross-sentence leakage is masked out, which is
    # exactly equivalent to per-sentence zero padding.
    pad = W // 2
    pos = jax.lax.broadcasted_iota(jnp.int32, (N, L, F), 1).reshape(NL, F)
    acc = jnp.dot(e0, cw_ref[pad], preferred_element_type=f32)    # center tap
    for w in range(W):                                            # static unroll
        off = w - pad                                             # input offset of tap w
        if off == 0:
            continue
        tap = jnp.dot(e0, cw_ref[w], preferred_element_type=f32)  # (N*L, F)
        rolled = pltpu.roll(tap, shift=(-off) % NL, axis=0)       # rolled[t]=tap[t+off]
        valid = (pos + off >= 0) & (pos + off < L)                # same sentence
        acc = acc + jnp.where(valid, rolled, 0.0)
    c0 = jnp.tanh(acc + cb_ref[...])                              # (N*L, F)

    # ---- a0 / s0: per-feature softmax over words + weighted sum -------------
    lg0 = (jnp.dot(c0, a0w_ref[...], preferred_element_type=f32)
           + a0b_ref[...]).reshape(N, L, F)
    mx0 = jnp.max(lg0, axis=1, keepdims=True)
    ex0 = jnp.exp(lg0 - mx0)
    a0 = ex0 / jnp.sum(ex0, axis=1, keepdims=True)                # (N, L, F)
    s0 = jnp.sum(a0 * c0.reshape(N, L, F), axis=1)                # (N, F)

    # ---- t0 / m0: pack sentences per essay + statically unrolled LSTM -------
    # sel_ref[j] is a (B, N) one-hot selector: essay b's j-th sentence (zero
    # row for padded slots) -> replaces the python t0 scatter loop.
    slot = jax.lax.broadcasted_iota(jnp.int32, (1, S, H), 1)      # slot index grid
    h = jnp.zeros((B, H), f32)
    c = jnp.zeros((B, H), f32)
    m0 = jnp.zeros((B, S, H), f32)
    for j in range(S):                                            # static unroll, S=4
        x_j = jnp.dot(sel_ref[j], s0, preferred_element_type=f32)     # (B, F)
        g = (jnp.dot(x_j, wih_ref[...], preferred_element_type=f32)
             + jnp.dot(h, whh_ref[...], preferred_element_type=f32)
             + lb_ref[...])                                       # (B, 4H) lane-dense
        i_g = jax.nn.sigmoid(g[:, 0 * H:1 * H])
        f_g = jax.nn.sigmoid(g[:, 1 * H:2 * H])
        g_g = jnp.tanh(g[:, 2 * H:3 * H])
        o_g = jax.nn.sigmoid(g[:, 3 * H:4 * H])
        c = f_g * c + i_g * g_g
        h = o_g * jnp.tanh(c)
        m0 = m0 + (slot == j).astype(f32) * h[:, None, :]         # write h into slot j
    # TODO(synk): LSTM also runs over padded sentence slots (masked out below);
    #             differs from pack_padded_sequence if the original Modeling used it.

    # ---- a1 / s1 / o0: masked sentence attention + Linear + sigmoid ---------
    mk = mask_ref[...]                                            # (B, S, 1)
    lg1 = (jnp.dot(m0.reshape(B * S, H), a1w_ref[...],
                   preferred_element_type=f32)
           + a1b_ref[...]).reshape(B, S, H)
    lg1 = lg1 + (mk - 1.0) * 1e9                                  # mask -> -inf
    mx1 = jnp.max(lg1, axis=1, keepdims=True)
    ex1 = jnp.exp(lg1 - mx1)
    a1 = ex1 / jnp.sum(ex1, axis=1, keepdims=True)                # softmax over sents
    s1 = jnp.sum(a1 * m0, axis=1)                                 # (B, H)
    o_ref[...] = jax.nn.sigmoid(
        jnp.dot(s1, ow_ref[...], preferred_element_type=f32) + ob_ref[...])


def _full_spec(shape):
    nd = len(shape)
    return pl.BlockSpec(shape, lambda i, _nd=nd: (0,) * _nd)


# ------------------------------- forward glue --------------------------------
@partial(jax.jit, static_argnames=("num_sent",))
def baseline_forward(params, input_ids, mask, num_sent):
    N, L = input_ids.shape
    B, S = len(num_sent), MAX_NUM_SENT
    E, F, H, V, W, O = EMB, NUM_FILTERS, HIDDEN, VOCAB, WINDOW, OUTPUT

    # static (trace-time) packing map: sel[j, b, :] = one-hot over the flat
    # sentence index of essay b's j-th sentence, zero row for padded slots.
    sel_np = np.zeros((S, B, N), np.float32)
    off = 0
    for b, ns in enumerate(num_sent):
        for j in range(ns):
            sel_np[j, b, off + j] = 1.0
        off += ns
    sel = jnp.asarray(sel_np)

    ids_flat = input_ids.reshape(N * L, 1).astype(jnp.int32)      # lane-1 column of ids

    kernel = partial(fused_forward_kernel,
                     N=N, L=L, E=E, V=V, F=F, W=W, B=B, S=S, H=H)
    return pl.pallas_call(
        kernel,
        out_shape=jax.ShapeDtypeStruct((B, O), jnp.float32),
        grid=(1,),
        in_specs=[_full_spec((N * L, 1)),        # token ids
                  _full_spec((B, S, 1)),         # sentence mask
                  _full_spec((S, B, N)),         # packing selectors
                  _full_spec((V, E)),            # embedding table
                  _full_spec((W, E, F)),         # conv weight (taps, in, out)
                  _full_spec((1, F)),            # conv bias
                  _full_spec((F, F)),            # a0 weight
                  _full_spec((1, F)),            # a0 bias
                  _full_spec((F, 4 * H)),        # lstm W_ih^T
                  _full_spec((H, 4 * H)),        # lstm W_hh^T
                  _full_spec((1, 4 * H)),        # lstm bias (b_ih + b_hh)
                  _full_spec((H, H)),            # a1 weight
                  _full_spec((1, H)),            # a1 bias
                  _full_spec((H, O)),            # output weight
                  _full_spec((1, O))],           # output bias
        out_specs=_full_spec((B, O)),
        compiler_params=pltpu.CompilerParams(
            dimension_semantics=("arbitrary",)),
        cost_estimate=pl.CostEstimate(flops=1_000_000,
                                      transcendentals=10_000,
                                      bytes_accessed=64_000),
    )(ids_flat, mask, sel, params["emb"], params["conv_w"], params["conv_b"],
      params["a0_w"], params["a0_b"],
      params["lstm_wih"], params["lstm_whh"], params["lstm_b"],
      params["a1_w"], params["a1_b"], params["out_w"], params["out_b"])


def init_params(key):
    ks = jax.random.split(key, 12)
    n = lambda k, s: (jax.random.normal(k, s, jnp.float32) * 0.1)
    return {
        "emb":      n(ks[0], (VOCAB, EMB)),
        # Conv1d weight stored kernel-ready as (W, E, F) == torch weight.permute(2,1,0)
        "conv_w":   n(ks[1], (WINDOW, EMB, NUM_FILTERS)),
        "conv_b":   n(ks[2], (1, NUM_FILTERS)),
        "a0_w":     n(ks[3], (NUM_FILTERS, NUM_FILTERS)),
        "a0_b":     n(ks[4], (1, NUM_FILTERS)),
        "lstm_wih": n(ks[5], (NUM_FILTERS, 4 * HIDDEN)),           # W_ih^T
        "lstm_whh": n(ks[6], (HIDDEN, 4 * HIDDEN)),                # W_hh^T
        "lstm_b":   n(ks[7], (1, 4 * HIDDEN)),                     # b_ih + b_hh combined
        "a1_w":     n(ks[8], (HIDDEN, HIDDEN)),
        "a1_b":     n(ks[9], (1, HIDDEN)),
        "out_w":    n(ks[10], (HIDDEN, OUTPUT)),
        "out_b":    n(ks[11], (1, OUTPUT)),
    }


if __name__ == "__main__":
    key = jax.random.PRNGKey(0)
    pkey, ikey = jax.random.split(key)
    params = init_params(pkey)

    # token ids per sentence (all essays' sentences flattened, as in the module)
    input_ids = jax.random.randint(ikey, (N_SENT, SEQ_LEN), 0, VOCAB, dtype=jnp.int32)
    # mask[b, j, 0] = 1 if sentence j exists in essay b (== mask.select(2, 0))
    mask_np = np.zeros((BATCH, MAX_NUM_SENT, 1), np.float32)
    for b, ns in enumerate(NUM_SENT):
        mask_np[b, :ns, 0] = 1.0
    mask = jnp.asarray(mask_np)

    out = baseline_forward(params, input_ids, mask, NUM_SENT)
    out = jax.block_until_ready(out)
    assert out.shape == (BATCH, OUTPUT), out.shape
    assert bool(jnp.all(jnp.isfinite(out)))
    print("KERNEL_OK")
</pallas_src>

<mosaic_0001>
module attributes {stable_mosaic.version = 11 : i64} {
  func.func @fused_forward_kernel(%arg0: i32, %arg1: memref<112x1xi32, #tpu.memory_space<vmem>>, %arg2: memref<2x4x1xf32, #tpu.memory_space<vmem>>, %arg3: memref<4x2x7xf32, #tpu.memory_space<vmem>>, %arg4: memref<50x16xf32, #tpu.memory_space<vmem>>, %arg5: memref<3x16x32xf32, #tpu.memory_space<vmem>>, %arg6: memref<1x32xf32, #tpu.memory_space<vmem>>, %arg7: memref<32x32xf32, #tpu.memory_space<vmem>>, %arg8: memref<1x32xf32, #tpu.memory_space<vmem>>, %arg9: memref<32x128xf32, #tpu.memory_space<vmem>>, %arg10: memref<32x128xf32, #tpu.memory_space<vmem>>, %arg11: memref<1x128xf32, #tpu.memory_space<vmem>>, %arg12: memref<32x32xf32, #tpu.memory_space<vmem>>, %arg13: memref<1x32xf32, #tpu.memory_space<vmem>>, %arg14: memref<32x1xf32, #tpu.memory_space<vmem>>, %arg15: memref<1x1xf32, #tpu.memory_space<vmem>>, %arg16: memref<2x1xf32, #tpu.memory_space<vmem>>) attributes {dimension_semantics = [#tpu.dimension_semantics<arbitrary>], iteration_bounds = array<i64: 1>, scalar_prefetch = 0 : i64, scratch_operands = 0 : i64, tpu.core_type = #tpu.core_type<tc>, window_params = [{pipeline_mode = #tpu.pipeline_mode<synchronous>, transform_indices = @transform_0, window_bounds = array<i64: 112, 1>}, {pipeline_mode = #tpu.pipeline_mode<synchronous>, transform_indices = @transform_1, window_bounds = array<i64: 2, 4, 1>}, {pipeline_mode = #tpu.pipeline_mode<synchronous>, transform_indices = @transform_2, window_bounds = array<i64: 4, 2, 7>}, {pipeline_mode = #tpu.pipeline_mode<synchronous>, transform_indices = @transform_3, window_bounds = array<i64: 50, 16>}, {pipeline_mode = #tpu.pipeline_mode<synchronous>, transform_indices = @transform_4, window_bounds = array<i64: 3, 16, 32>}, {pipeline_mode = #tpu.pipeline_mode<synchronous>, transform_indices = @transform_5, window_bounds = array<i64: 1, 32>}, {pipeline_mode = #tpu.pipeline_mode<synchronous>, transform_indices = @transform_6, window_bounds = array<i64: 32, 32>}, {pipeline_mode = #tpu.pipeline_mode<synchronous>, transform_indices = @transform_7, window_bounds = array<i64: 1, 32>}, {pipeline_mode = #tpu.pipeline_mode<synchronous>, transform_indices = @transform_8, window_bounds = array<i64: 32, 128>}, {pipeline_mode = #tpu.pipeline_mode<synchronous>, transform_indices = @transform_9, window_bounds = array<i64: 32, 128>}, {pipeline_mode = #tpu.pipeline_mode<synchronous>, transform_indices = @transform_10, window_bounds = array<i64: 1, 128>}, {pipeline_mode = #tpu.pipeline_mode<synchronous>, transform_indices = @transform_11, window_bounds = array<i64: 32, 32>}, {pipeline_mode = #tpu.pipeline_mode<synchronous>, transform_indices = @transform_12, window_bounds = array<i64: 1, 32>}, {pipeline_mode = #tpu.pipeline_mode<synchronous>, transform_indices = @transform_13, window_bounds = array<i64: 32, 1>}, {pipeline_mode = #tpu.pipeline_mode<synchronous>, transform_indices = @transform_14, window_bounds = array<i64: 1, 1>}, {pipeline_mode = #tpu.pipeline_mode<synchronous>, transform_indices = @transform_15, window_bounds = array<i64: 2, 1>}]} {
    %c0 = arith.constant 0 : index
    %c0_0 = arith.constant 0 : index
    %0 = vector.load %arg1[%c0, %c0_0] : memref<112x1xi32, #tpu.memory_space<vmem>>, vector<112x1xi32>
    %1 = tpu.iota {dimensions = array<i32: 1>} : vector<112x50xi32>
    %2 = vector.broadcast %0 : vector<112x1xi32> to vector<112x50xi32>
    %3 = arith.cmpi eq, %2, %1 : vector<112x50xi32>
    %4 = arith.extui %3 : vector<112x50xi1> to vector<112x50xi32>
    %5 = arith.sitofp %4 : vector<112x50xi32> to vector<112x50xf32>
    %c0_1 = arith.constant 0 : index
    %c0_2 = arith.constant 0 : index
    %6 = vector.load %arg4[%c0_1, %c0_2] : memref<50x16xf32, #tpu.memory_space<vmem>>, vector<50x16xf32>
    %cst = arith.constant dense<0.000000e+00> : vector<112x16xf32>
    %7 = tpu.matmul %5, %6, %cst {dimension_numbers = #tpu.dot_dimension_numbers<[1], [0], [0], [1], [0, 0, 1, 1], [], []>} : vector<112x50xf32>, vector<50x16xf32>, vector<112x16xf32> -> vector<112x16xf32>
    %8 = tpu.iota {dimensions = array<i32: 1>} : vector<7x16x32xi32>
    %9 = vector.shape_cast %8 : vector<7x16x32xi32> to vector<112x32xi32>
    %c1 = arith.constant 1 : index
    %c0_3 = arith.constant 0 : index
    %c0_4 = arith.constant 0 : index
    %10 = vector.load %arg5[%c1, %c0_3, %c0_4] : memref<3x16x32xf32, #tpu.memory_space<vmem>>, vector<1x16x32xf32>
    %11 = vector.shape_cast %10 : vector<1x16x32xf32> to vector<16x32xf32>
    %cst_5 = arith.constant dense<0.000000e+00> : vector<112x32xf32>
    %12 = tpu.matmul %7, %11, %cst_5 {dimension_numbers = #tpu.dot_dimension_numbers<[1], [0], [0], [1], [0, 0, 1, 1], [], []>} : vector<112x16xf32>, vector<16x32xf32>, vector<112x32xf32> -> vector<112x32xf32>
    %c0_6 = arith.constant 0 : index
    %c0_7 = arith.constant 0 : index
    %c0_8 = arith.constant 0 : index
    %13 = vector.load %arg5[%c0_6, %c0_7, %c0_8] : memref<3x16x32xf32, #tpu.memory_space<vmem>>, vector<1x16x32xf32>
    %14 = vector.shape_cast %13 : vector<1x16x32xf32> to vector<16x32xf32>
    %cst_9 = arith.constant dense<0.000000e+00> : vector<112x32xf32>
    %15 = tpu.matmul %7, %14, %cst_9 {dimension_numbers = #tpu.dot_dimension_numbers<[1], [0], [0], [1], [0, 0, 1, 1], [], []>} : vector<112x16xf32>, vector<16x32xf32>, vector<112x32xf32> -> vector<112x32xf32>
    %c1_i32 = arith.constant 1 : i32
    %16 = tpu.dynamic_rotate %15 by %c1_i32 dim 0 : vector<112x32xf32>, i32 -> vector<112x32xf32>
    %c-1_i32 = arith.constant -1 : i32
    %17 = vector.broadcast %c-1_i32 : i32 to vector<112x32xi32>
    %18 = arith.addi %9, %17 : vector<112x32xi32>
    %c0_i32 = arith.constant 0 : i32
    %19 = vector.broadcast %c0_i32 : i32 to vector<112x32xi32>
    %20 = arith.cmpi sge, %18, %19 : vector<112x32xi32>
    %c-1_i32_10 = arith.constant -1 : i32
    %21 = vector.broadcast %c-1_i32_10 : i32 to vector<112x32xi32>
    %22 = arith.addi %9, %21 : vector<112x32xi32>
    %c16_i32 = arith.constant 16 : i32
    %23 = vector.broadcast %c16_i32 : i32 to vector<112x32xi32>
    %24 = arith.cmpi slt, %22, %23 : vector<112x32xi32>
    %25 = arith.andi %20, %24 : vector<112x32xi1>
    %cst_11 = arith.constant 0.000000e+00 : f32
    %26 = vector.broadcast %cst_11 : f32 to vector<112x32xf32>
    %27 = arith.select %25, %16, %26 : vector<112x32xi1>, vector<112x32xf32>
    %28 = arith.addf %12, %27 : vector<112x32xf32>
    %c2 = arith.constant 2 : index
    %c0_12 = arith.constant 0 : index
    %c0_13 = arith.constant 0 : index
    %29 = vector.load %arg5[%c2, %c0_12, %c0_13] : memref<3x16x32xf32, #tpu.memory_space<vmem>>, vector<1x16x32xf32>
    %30 = vector.shape_cast %29 : vector<1x16x32xf32> to vector<16x32xf32>
    %cst_14 = arith.constant dense<0.000000e+00> : vector<112x32xf32>
    %31 = tpu.matmul %7, %30, %cst_14 {dimension_numbers = #tpu.dot_dimension_numbers<[1], [0], [0], [1], [0, 0, 1, 1], [], []>} : vector<112x16xf32>, vector<16x32xf32>, vector<112x32xf32> -> vector<112x32xf32>
    %c111_i32 = arith.constant 111 : i32
    %32 = tpu.dynamic_rotate %31 by %c111_i32 dim 0 : vector<112x32xf32>, i32 -> vector<112x32xf32>
    %c1_i32_15 = arith.constant 1 : i32
    %33 = vector.broadcast %c1_i32_15 : i32 to vector<112x32xi32>
    %34 = arith.addi %9, %33 : vector<112x32xi32>
    %c0_i32_16 = arith.constant 0 : i32
    %35 = vector.broadcast %c0_i32_16 : i32 to vector<112x32xi32>
    %36 = arith.cmpi sge, %34, %35 : vector<112x32xi32>
    %c1_i32_17 = arith.constant 1 : i32
    %37 = vector.broadcast %c1_i32_17 : i32 to vector<112x32xi32>
    %38 = arith.addi %9, %37 : vector<112x32xi32>
    %c16_i32_18 = arith.constant 16 : i32
    %39 = vector.broadcast %c16_i32_18 : i32 to vector<112x32xi32>
    %40 = arith.cmpi slt, %38, %39 : vector<112x32xi32>
    %41 = arith.andi %36, %40 : vector<112x32xi1>
    %cst_19 = arith.constant 0.000000e+00 : f32
    %42 = vector.broadcast %cst_19 : f32 to vector<112x32xf32>
    %43 = arith.select %41, %32, %42 : vector<112x32xi1>, vector<112x32xf32>
    %44 = arith.addf %28, %43 : vector<112x32xf32>
    %c0_20 = arith.constant 0 : index
    %c0_21 = arith.constant 0 : index
    %45 = vector.load %arg6[%c0_20, %c0_21] : memref<1x32xf32, #tpu.memory_space<vmem>>, vector<1x32xf32>
    %46 = vector.broadcast %45 : vector<1x32xf32> to vector<112x32xf32>
    %47 = arith.addf %44, %46 : vector<112x32xf32>
    %48 = math.tanh %47 : vector<112x32xf32>
    %c0_22 = arith.constant 0 : index
    %c0_23 = arith.constant 0 : index
    %49 = vector.load %arg7[%c0_22, %c0_23] : memref<32x32xf32, #tpu.memory_space<vmem>>, vector<32x32xf32>
    %cst_24 = arith.constant dense<0.000000e+00> : vector<112x32xf32>
    %50 = tpu.matmul %48, %49, %cst_24 {dimension_numbers = #tpu.dot_dimension_numbers<[1], [0], [0], [1], [0, 0, 1, 1], [], []>} : vector<112x32xf32>, vector<32x32xf32>, vector<112x32xf32> -> vector<112x32xf32>
    %c0_25 = arith.constant 0 : index
    %c0_26 = arith.constant 0 : index
    %51 = vector.load %arg8[%c0_25, %c0_26] : memref<1x32xf32, #tpu.memory_space<vmem>>, vector<1x32xf32>
    %52 = vector.broadcast %51 : vector<1x32xf32> to vector<112x32xf32>
    %53 = arith.addf %50, %52 : vector<112x32xf32>
    %54 = vector.shape_cast %53 : vector<112x32xf32> to vector<7x16x32xf32>
    %cst_27 = arith.constant dense<0xFF800000> : vector<7x32xf32>
    %55 = vector.multi_reduction <maximumf>, %54, %cst_27 [1] : vector<7x16x32xf32> to vector<7x32xf32>
    %56 = vector.shape_cast %55 : vector<7x32xf32> to vector<7x1x32xf32>
    %57 = vector.broadcast %56 : vector<7x1x32xf32> to vector<7x16x32xf32>
    %58 = arith.subf %54, %57 : vector<7x16x32xf32>
    %59 = math.exp %58 : vector<7x16x32xf32>
    %cst_28 = arith.constant dense<0.000000e+00> : vector<7x32xf32>
    %60 = vector.multi_reduction <add>, %59, %cst_28 [1] : vector<7x16x32xf32> to vector<7x32xf32>
    %61 = vector.shape_cast %60 : vector<7x32xf32> to vector<7x1x32xf32>
    %62 = vector.broadcast %61 : vector<7x1x32xf32> to vector<7x16x32xf32>
    %63 = arith.divf %59, %62 : vector<7x16x32xf32>
    %64 = vector.shape_cast %48 : vector<112x32xf32> to vector<7x16x32xf32>
    %65 = arith.mulf %63, %64 : vector<7x16x32xf32>
    %cst_29 = arith.constant dense<0.000000e+00> : vector<7x32xf32>
    %66 = vector.multi_reduction <add>, %65, %cst_29 [1] : vector<7x16x32xf32> to vector<7x32xf32>
    %67 = tpu.iota {dimensions = array<i32: 1>} : vector<1x4x32xi32>
    %cst_30 = arith.constant 0.000000e+00 : f32
    %68 = vector.broadcast %cst_30 : f32 to vector<2x32xf32>
    %cst_31 = arith.constant 0.000000e+00 : f32
    %69 = vector.broadcast %cst_31 : f32 to vector<2x32xf32>
    %cst_32 = arith.constant 0.000000e+00 : f32
    %70 = vector.broadcast %cst_32 : f32 to vector<2x4x32xf32>
    %c0_33 = arith.constant 0 : index
    %c0_34 = arith.constant 0 : index
    %c0_35 = arith.constant 0 : index
    %71 = vector.load %arg3[%c0_33, %c0_34, %c0_35] : memref<4x2x7xf32, #tpu.memory_space<vmem>>, vector<1x2x7xf32>
    %72 = vector.shape_cast %71 : vector<1x2x7xf32> to vector<2x7xf32>
    %cst_36 = arith.constant dense<0.000000e+00> : vector<2x32xf32>
    %73 = tpu.matmul %72, %66, %cst_36 {dimension_numbers = #tpu.dot_dimension_numbers<[1], [0], [0], [1], [0, 0, 1, 1], [], []>} : vector<2x7xf32>, vector<7x32xf32>, vector<2x32xf32> -> vector<2x32xf32>
    %c0_37 = arith.constant 0 : index
    %c0_38 = arith.constant 0 : index
    %74 = vector.load %arg9[%c0_37, %c0_38] : memref<32x128xf32, #tpu.memory_space<vmem>>, vector<32x128xf32>
    %cst_39 = arith.constant dense<0.000000e+00> : vector<2x128xf32>
    %75 = tpu.matmul %73, %74, %cst_39 {dimension_numbers = #tpu.dot_dimension_numbers<[1], [0], [0], [1], [0, 0, 1, 1], [], []>} : vector<2x32xf32>, vector<32x128xf32>, vector<2x128xf32> -> vector<2x128xf32>
    %c0_40 = arith.constant 0 : index
    %c0_41 = arith.constant 0 : index
    %76 = vector.load %arg10[%c0_40, %c0_41] : memref<32x128xf32, #tpu.memory_space<vmem>>, vector<32x128xf32>
    %cst_42 = arith.constant dense<0.000000e+00> : vector<2x128xf32>
    %77 = tpu.matmul %68, %76, %cst_42 {dimension_numbers = #tpu.dot_dimension_numbers<[1], [0], [0], [1], [0, 0, 1, 1], [], []>} : vector<2x32xf32>, vector<32x128xf32>, vector<2x128xf32> -> vector<2x128xf32>
    %78 = arith.addf %75, %77 : vector<2x128xf32>
    %c0_43 = arith.constant 0 : index
    %c0_44 = arith.constant 0 : index
    %79 = vector.load %arg11[%c0_43, %c0_44] : memref<1x128xf32, #tpu.memory_space<vmem>>, vector<1x128xf32>
    %80 = vector.broadcast %79 : vector<1x128xf32> to vector<2x128xf32>
    %81 = arith.addf %78, %80 : vector<2x128xf32>
    %82 = vector.extract_strided_slice %81 {offsets = [0, 0], sizes = [2, 32], strides = [1, 1]} : vector<2x128xf32> to vector<2x32xf32>
    %83 = arith.negf %82 : vector<2x32xf32>
    %84 = math.exp %83 : vector<2x32xf32>
    %cst_45 = arith.constant 1.000000e+00 : f32
    %85 = vector.broadcast %cst_45 : f32 to vector<2x32xf32>
    %86 = arith.addf %85, %84 : vector<2x32xf32>
    %87 = arith.divf %85, %86 : vector<2x32xf32>
    %88 = vector.extract_strided_slice %81 {offsets = [0, 32], sizes = [2, 32], strides = [1, 1]} : vector<2x128xf32> to vector<2x32xf32>
    %89 = arith.negf %88 : vector<2x32xf32>
    %90 = math.exp %89 : vector<2x32xf32>
    %cst_46 = arith.constant 1.000000e+00 : f32
    %91 = vector.broadcast %cst_46 : f32 to vector<2x32xf32>
    %92 = arith.addf %91, %90 : vector<2x32xf32>
    %93 = arith.divf %91, %92 : vector<2x32xf32>
    %94 = vector.extract_strided_slice %81 {offsets = [0, 64], sizes = [2, 32], strides = [1, 1]} : vector<2x128xf32> to vector<2x32xf32>
    %95 = math.tanh %94 : vector<2x32xf32>
    %96 = vector.extract_strided_slice %81 {offsets = [0, 96], sizes = [2, 32], strides = [1, 1]} : vector<2x128xf32> to vector<2x32xf32>
    %97 = arith.negf %96 : vector<2x32xf32>
    %98 = math.exp %97 : vector<2x32xf32>
    %cst_47 = arith.constant 1.000000e+00 : f32
    %99 = vector.broadcast %cst_47 : f32 to vector<2x32xf32>
    %100 = arith.addf %99, %98 : vector<2x32xf32>
    %101 = arith.divf %99, %100 : vector<2x32xf32>
    %102 = arith.mulf %93, %69 : vector<2x32xf32>
    %103 = arith.mulf %87, %95 : vector<2x32xf32>
    %104 = arith.addf %102, %103 : vector<2x32xf32>
    %105 = math.tanh %104 : vector<2x32xf32>
    %106 = arith.mulf %101, %105 : vector<2x32xf32>
    %c0_i32_48 = arith.constant 0 : i32
    %107 = vector.broadcast %c0_i32_48 : i32 to vector<1x4x32xi32>
    %108 = arith.cmpi eq, %67, %107 : vector<1x4x32xi32>
    %109 = arith.extui %108 : vector<1x4x32xi1> to vector<1x4x32xi32>
    %110 = arith.sitofp %109 : vector<1x4x32xi32> to vector<1x4x32xf32>
    %111 = vector.shape_cast %106 : vector<2x32xf32> to vector<2x1x32xf32>
    %112 = vector.broadcast %110 : vector<1x4x32xf32> to vector<2x4x32xf32>
    %113 = vector.broadcast %111 : vector<2x1x32xf32> to vector<2x4x32xf32>
    %114 = arith.mulf %112, %113 : vector<2x4x32xf32>
    %115 = arith.addf %70, %114 : vector<2x4x32xf32>
    %c1_49 = arith.constant 1 : index
    %c0_50 = arith.constant 0 : index
    %c0_51 = arith.constant 0 : index
    %116 = vector.load %arg3[%c1_49, %c0_50, %c0_51] : memref<4x2x7xf32, #tpu.memory_space<vmem>>, vector<1x2x7xf32>
    %117 = vector.shape_cast %116 : vector<1x2x7xf32> to vector<2x7xf32>
    %cst_52 = arith.constant dense<0.000000e+00> : vector<2x32xf32>
    %118 = tpu.matmul %117, %66, %cst_52 {dimension_numbers = #tpu.dot_dimension_numbers<[1], [0], [0], [1], [0, 0, 1, 1], [], []>} : vector<2x7xf32>, vector<7x32xf32>, vector<2x32xf32> -> vector<2x32xf32>
    %c0_53 = arith.constant 0 : index
    %c0_54 = arith.constant 0 : index
    %119 = vector.load %arg9[%c0_53, %c0_54] : memref<32x128xf32, #tpu.memory_space<vmem>>, vector<32x128xf32>
    %cst_55 = arith.constant dense<0.000000e+00> : vector<2x128xf32>
    %120 = tpu.matmul %118, %119, %cst_55 {dimension_numbers = #tpu.dot_dimension_numbers<[1], [0], [0], [1], [0, 0, 1, 1], [], []>} : vector<2x32xf32>, vector<32x128xf32>, vector<2x128xf32> -> vector<2x128xf32>
    %c0_56 = arith.constant 0 : index
    %c0_57 = arith.constant 0 : index
    %121 = vector.load %arg10[%c0_56, %c0_57] : memref<32x128xf32, #tpu.memory_space<vmem>>, vector<32x128xf32>
    %cst_58 = arith.constant dense<0.000000e+00> : vector<2x128xf32>
    %122 = tpu.matmul %106, %121, %cst_58 {dimension_numbers = #tpu.dot_dimension_numbers<[1], [0], [0], [1], [0, 0, 1, 1], [], []>} : vector<2x32xf32>, vector<32x128xf32>, vector<2x128xf32> -> vector<2x128xf32>
    %123 = arith.addf %120, %122 : vector<2x128xf32>
    %c0_59 = arith.constant 0 : index
    %c0_60 = arith.constant 0 : index
    %124 = vector.load %arg11[%c0_59, %c0_60] : memref<1x128xf32, #tpu.memory_space<vmem>>, vector<1x128xf32>
    %125 = vector.broadcast %124 : vector<1x128xf32> to vector<2x128xf32>
    %126 = arith.addf %123, %125 : vector<2x128xf32>
    %127 = vector.extract_strided_slice %126 {offsets = [0, 0], sizes = [2, 32], strides = [1, 1]} : vector<2x128xf32> to vector<2x32xf32>
    %128 = arith.negf %127 : vector<2x32xf32>
    %129 = math.exp %128 : vector<2x32xf32>
    %cst_61 = arith.constant 1.000000e+00 : f32
    %130 = vector.broadcast %cst_61 : f32 to vector<2x32xf32>
    %131 = arith.addf %130, %129 : vector<2x32xf32>
    %132 = arith.divf %130, %131 : vector<2x32xf32>
    %133 = vector.extract_strided_slice %126 {offsets = [0, 32], sizes = [2, 32], strides = [1, 1]} : vector<2x128xf32> to vector<2x32xf32>
    %134 = arith.negf %133 : vector<2x32xf32>
    %135 = math.exp %134 : vector<2x32xf32>
    %cst_62 = arith.constant 1.000000e+00 : f32
    %136 = vector.broadcast %cst_62 : f32 to vector<2x32xf32>
    %137 = arith.addf %136, %135 : vector<2x32xf32>
    %138 = arith.divf %136, %137 : vector<2x32xf32>
    %139 = vector.extract_strided_slice %126 {offsets = [0, 64], sizes = [2, 32], strides = [1, 1]} : vector<2x128xf32> to vector<2x32xf32>
    %140 = math.tanh %139 : vector<2x32xf32>
    %141 = vector.extract_strided_slice %126 {offsets = [0, 96], sizes = [2, 32], strides = [1, 1]} : vector<2x128xf32> to vector<2x32xf32>
    %142 = arith.negf %141 : vector<2x32xf32>
    %143 = math.exp %142 : vector<2x32xf32>
    %cst_63 = arith.constant 1.000000e+00 : f32
    %144 = vector.broadcast %cst_63 : f32 to vector<2x32xf32>
    %145 = arith.addf %144, %143 : vector<2x32xf32>
    %146 = arith.divf %144, %145 : vector<2x32xf32>
    %147 = arith.mulf %138, %104 : vector<2x32xf32>
    %148 = arith.mulf %132, %140 : vector<2x32xf32>
    %149 = arith.addf %147, %148 : vector<2x32xf32>
    %150 = math.tanh %149 : vector<2x32xf32>
    %151 = arith.mulf %146, %150 : vector<2x32xf32>
    %c1_i32_64 = arith.constant 1 : i32
    %152 = vector.broadcast %c1_i32_64 : i32 to vector<1x4x32xi32>
    %153 = arith.cmpi eq, %67, %152 : vector<1x4x32xi32>
    %154 = arith.extui %153 : vector<1x4x32xi1> to vector<1x4x32xi32>
    %155 = arith.sitofp %154 : vector<1x4x32xi32> to vector<1x4x32xf32>
    %156 = vector.shape_cast %151 : vector<2x32xf32> to vector<2x1x32xf32>
    %157 = vector.broadcast %155 : vector<1x4x32xf32> to vector<2x4x32xf32>
    %158 = vector.broadcast %156 : vector<2x1x32xf32> to vector<2x4x32xf32>
    %159 = arith.mulf %157, %158 : vector<2x4x32xf32>
    %160 = arith.addf %115, %159 : vector<2x4x32xf32>
    %c2_65 = arith.constant 2 : index
    %c0_66 = arith.constant 0 : index
    %c0_67 = arith.constant 0 : index
    %161 = vector.load %arg3[%c2_65, %c0_66, %c0_67] : memref<4x2x7xf32, #tpu.memory_space<vmem>>, vector<1x2x7xf32>
    %162 = vector.shape_cast %161 : vector<1x2x7xf32> to vector<2x7xf32>
    %cst_68 = arith.constant dense<0.000000e+00> : vector<2x32xf32>
    %163 = tpu.matmul %162, %66, %cst_68 {dimension_numbers = #tpu.dot_dimension_numbers<[1], [0], [0], [1], [0, 0, 1, 1], [], []>} : vector<2x7xf32>, vector<7x32xf32>, vector<2x32xf32> -> vector<2x32xf32>
    %c0_69 = arith.constant 0 : index
    %c0_70 = arith.constant 0 : index
    %164 = vector.load %arg9[%c0_69, %c0_70] : memref<32x128xf32, #tpu.memory_space<vmem>>, vector<32x128xf32>
    %cst_71 = arith.constant dense<0.000000e+00> : vector<2x128xf32>
    %165 = tpu.matmul %163, %164, %cst_71 {dimension_numbers = #tpu.dot_dimension_numbers<[1], [0], [0], [1], [0, 0, 1, 1], [], []>} : vector<2x32xf32>, vector<32x128xf32>, vector<2x128xf32> -> vector<2x128xf32>
    %c0_72 = arith.constant 0 : index
    %c0_73 = arith.constant 0 : index
    %166 = vector.load %arg10[%c0_72, %c0_73] : memref<32x128xf32, #tpu.memory_space<vmem>>, vector<32x128xf32>
    %cst_74 = arith.constant dense<0.000000e+00> : vector<2x128xf32>
    %167 = tpu.matmul %151, %166, %cst_74 {dimension_numbers = #tpu.dot_dimension_numbers<[1], [0], [0], [1], [0, 0, 1, 1], [], []>} : vector<2x32xf32>, vector<32x128xf32>, vector<2x128xf32> -> vector<2x128xf32>
    %168 = arith.addf %165, %167 : vector<2x128xf32>
    %c0_75 = arith.constant 0 : index
    %c0_76 = arith.constant 0 : index
    %169 = vector.load %arg11[%c0_75, %c0_76] : memref<1x128xf32, #tpu.memory_space<vmem>>, vector<1x128xf32>
    %170 = vector.broadcast %169 : vector<1x128xf32> to vector<2x128xf32>
    %171 = arith.addf %168, %170 : vector<2x128xf32>
    %172 = vector.extract_strided_slice %171 {offsets = [0, 0], sizes = [2, 32], strides = [1, 1]} : vector<2x128xf32> to vector<2x32xf32>
    %173 = arith.negf %172 : vector<2x32xf32>
    %174 = math.exp %173 : vector<2x32xf32>
    %cst_77 = arith.constant 1.000000e+00 : f32
    %175 = vector.broadcast %cst_77 : f32 to vector<2x32xf32>
    %176 = arith.addf %175, %174 : vector<2x32xf32>
    %177 = arith.divf %175, %176 : vector<2x32xf32>
    %178 = vector.extract_strided_slice %171 {offsets = [0, 32], sizes = [2, 32], strides = [1, 1]} : vector<2x128xf32> to vector<2x32xf32>
    %179 = arith.negf %178 : vector<2x32xf32>
    %180 = math.exp %179 : vector<2x32xf32>
    %cst_78 = arith.constant 1.000000e+00 : f32
    %181 = vector.broadcast %cst_78 : f32 to vector<2x32xf32>
    %182 = arith.addf %181, %180 : vector<2x32xf32>
    %183 = arith.divf %181, %182 : vector<2x32xf32>
    %184 = vector.extract_strided_slice %171 {offsets = [0, 64], sizes = [2, 32], strides = [1, 1]} : vector<2x128xf32> to vector<2x32xf32>
    %185 = math.tanh %184 : vector<2x32xf32>
    %186 = vector.extract_strided_slice %171 {offsets = [0, 96], sizes = [2, 32], strides = [1, 1]} : vector<2x128xf32> to vector<2x32xf32>
    %187 = arith.negf %186 : vector<2x32xf32>
    %188 = math.exp %187 : vector<2x32xf32>
    %cst_79 = arith.constant 1.000000e+00 : f32
    %189 = vector.broadcast %cst_79 : f32 to vector<2x32xf32>
    %190 = arith.addf %189, %188 : vector<2x32xf32>
    %191 = arith.divf %189, %190 : vector<2x32xf32>
    %192 = arith.mulf %183, %149 : vector<2x32xf32>
    %193 = arith.mulf %177, %185 : vector<2x32xf32>
    %194 = arith.addf %192, %193 : vector<2x32xf32>
    %195 = math.tanh %194 : vector<2x32xf32>
    %196 = arith.mulf %191, %195 : vector<2x32xf32>
    %c2_i32 = arith.constant 2 : i32
    %197 = vector.broadcast %c2_i32 : i32 to vector<1x4x32xi32>
    %198 = arith.cmpi eq, %67, %197 : vector<1x4x32xi32>
    %199 = arith.extui %198 : vector<1x4x32xi1> to vector<1x4x32xi32>
    %200 = arith.sitofp %199 : vector<1x4x32xi32> to vector<1x4x32xf32>
    %201 = vector.shape_cast %196 : vector<2x32xf32> to vector<2x1x32xf32>
    %202 = vector.broadcast %200 : vector<1x4x32xf32> to vector<2x4x32xf32>
    %203 = vector.broadcast %201 : vector<2x1x32xf32> to vector<2x4x32xf32>
    %204 = arith.mulf %202, %203 : vector<2x4x32xf32>
    %205 = arith.addf %160, %204 : vector<2x4x32xf32>
    %c3 = arith.constant 3 : index
    %c0_80 = arith.constant 0 : index
    %c0_81 = arith.constant 0 : index
    %206 = vector.load %arg3[%c3, %c0_80, %c0_81] : memref<4x2x7xf32, #tpu.memory_space<vmem>>, vector<1x2x7xf32>
    %207 = vector.shape_cast %206 : vector<1x2x7xf32> to vector<2x7xf32>
    %cst_82 = arith.constant dense<0.000000e+00> : vector<2x32xf32>
    %208 = tpu.matmul %207, %66, %cst_82 {dimension_numbers = #tpu.dot_dimension_numbers<[1], [0], [0], [1], [0, 0, 1, 1], [], []>} : vector<2x7xf32>, vector<7x32xf32>, vector<2x32xf32> -> vector<2x32xf32>
    %c0_83 = arith.constant 0 : index
    %c0_84 = arith.constant 0 : index
    %209 = vector.load %arg9[%c0_83, %c0_84] : memref<32x128xf32, #tpu.memory_space<vmem>>, vector<32x128xf32>
    %cst_85 = arith.constant dense<0.000000e+00> : vector<2x128xf32>
    %210 = tpu.matmul %208, %209, %cst_85 {dimension_numbers = #tpu.dot_dimension_numbers<[1], [0], [0], [1], [0, 0, 1, 1], [], []>} : vector<2x32xf32>, vector<32x128xf32>, vector<2x128xf32> -> vector<2x128xf32>
    %c0_86 = arith.constant 0 : index
    %c0_87 = arith.constant 0 : index
    %211 = vector.load %arg10[%c0_86, %c0_87] : memref<32x128xf32, #tpu.memory_space<vmem>>, vector<32x128xf32>
    %cst_88 = arith.constant dense<0.000000e+00> : vector<2x128xf32>
    %212 = tpu.matmul %196, %211, %cst_88 {dimension_numbers = #tpu.dot_dimension_numbers<[1], [0], [0], [1], [0, 0, 1, 1], [], []>} : vector<2x32xf32>, vector<32x128xf32>, vector<2x128xf32> -> vector<2x128xf32>
    %213 = arith.addf %210, %212 : vector<2x128xf32>
    %c0_89 = arith.constant 0 : index
    %c0_90 = arith.constant 0 : index
    %214 = vector.load %arg11[%c0_89, %c0_90] : memref<1x128xf32, #tpu.memory_space<vmem>>, vector<1x128xf32>
    %215 = vector.broadcast %214 : vector<1x128xf32> to vector<2x128xf32>
    %216 = arith.addf %213, %215 : vector<2x128xf32>
    %217 = vector.extract_strided_slice %216 {offsets = [0, 0], sizes = [2, 32], strides = [1, 1]} : vector<2x128xf32> to vector<2x32xf32>
    %218 = arith.negf %217 : vector<2x32xf32>
    %219 = math.exp %218 : vector<2x32xf32>
    %cst_91 = arith.constant 1.000000e+00 : f32
    %220 = vector.broadcast %cst_91 : f32 to vector<2x32xf32>
    %221 = arith.addf %220, %219 : vector<2x32xf32>
    %222 = arith.divf %220, %221 : vector<2x32xf32>
    %223 = vector.extract_strided_slice %216 {offsets = [0, 32], sizes = [2, 32], strides = [1, 1]} : vector<2x128xf32> to vector<2x32xf32>
    %224 = arith.negf %223 : vector<2x32xf32>
    %225 = math.exp %224 : vector<2x32xf32>
    %cst_92 = arith.constant 1.000000e+00 : f32
    %226 = vector.broadcast %cst_92 : f32 to vector<2x32xf32>
    %227 = arith.addf %226, %225 : vector<2x32xf32>
    %228 = arith.divf %226, %227 : vector<2x32xf32>
    %229 = vector.extract_strided_slice %216 {offsets = [0, 64], sizes = [2, 32], strides = [1, 1]} : vector<2x128xf32> to vector<2x32xf32>
    %230 = math.tanh %229 : vector<2x32xf32>
    %231 = vector.extract_strided_slice %216 {offsets = [0, 96], sizes = [2, 32], strides = [1, 1]} : vector<2x128xf32> to vector<2x32xf32>
    %232 = arith.negf %231 : vector<2x32xf32>
    %233 = math.exp %232 : vector<2x32xf32>
    %cst_93 = arith.constant 1.000000e+00 : f32
    %234 = vector.broadcast %cst_93 : f32 to vector<2x32xf32>
    %235 = arith.addf %234, %233 : vector<2x32xf32>
    %236 = arith.divf %234, %235 : vector<2x32xf32>
    %237 = arith.mulf %228, %194 : vector<2x32xf32>
    %238 = arith.mulf %222, %230 : vector<2x32xf32>
    %239 = arith.addf %237, %238 : vector<2x32xf32>
    %240 = math.tanh %239 : vector<2x32xf32>
    %241 = arith.mulf %236, %240 : vector<2x32xf32>
    %c3_i32 = arith.constant 3 : i32
    %242 = vector.broadcast %c3_i32 : i32 to vector<1x4x32xi32>
    %243 = arith.cmpi eq, %67, %242 : vector<1x4x32xi32>
    %244 = arith.extui %243 : vector<1x4x32xi1> to vector<1x4x32xi32>
    %245 = arith.sitofp %244 : vector<1x4x32xi32> to vector<1x4x32xf32>
    %246 = vector.shape_cast %241 : vector<2x32xf32> to vector<2x1x32xf32>
    %247 = vector.broadcast %245 : vector<1x4x32xf32> to vector<2x4x32xf32>
    %248 = vector.broadcast %246 : vector<2x1x32xf32> to vector<2x4x32xf32>
    %249 = arith.mulf %247, %248 : vector<2x4x32xf32>
    %250 = arith.addf %205, %249 : vector<2x4x32xf32>
    %c0_94 = arith.constant 0 : index
    %c0_95 = arith.constant 0 : index
    %c0_96 = arith.constant 0 : index
    %251 = vector.load %arg2[%c0_94, %c0_95, %c0_96] : memref<2x4x1xf32, #tpu.memory_space<vmem>>, vector<2x4x1xf32>
    %252 = vector.shape_cast %250 : vector<2x4x32xf32> to vector<8x32xf32>
    %c0_97 = arith.constant 0 : index
    %c0_98 = arith.constant 0 : index
    %253 = vector.load %arg12[%c0_97, %c0_98] : memref<32x32xf32, #tpu.memory_space<vmem>>, vector<32x32xf32>
    %cst_99 = arith.constant dense<0.000000e+00> : vector<8x32xf32>
    %254 = tpu.matmul %252, %253, %cst_99 {dimension_numbers = #tpu.dot_dimension_numbers<[1], [0], [0], [1], [0, 0, 1, 1], [], []>} : vector<8x32xf32>, vector<32x32xf32>, vector<8x32xf32> -> vector<8x32xf32>
    %c0_100 = arith.constant 0 : index
    %c0_101 = arith.constant 0 : index
    %255 = vector.load %arg13[%c0_100, %c0_101] : memref<1x32xf32, #tpu.memory_space<vmem>>, vector<1x32xf32>
    %256 = vector.broadcast %255 : vector<1x32xf32> to vector<8x32xf32>
    %257 = arith.addf %254, %256 : vector<8x32xf32>
    %258 = vector.shape_cast %257 : vector<8x32xf32> to vector<2x4x32xf32>
    %cst_102 = arith.constant 1.000000e+00 : f32
    %259 = vector.broadcast %cst_102 : f32 to vector<2x4x1xf32>
    %260 = arith.subf %251, %259 : vector<2x4x1xf32>
    %cst_103 = arith.constant 1.000000e+09 : f32
    %261 = vector.broadcast %cst_103 : f32 to vector<2x4x1xf32>
    %262 = arith.mulf %260, %261 : vector<2x4x1xf32>
    %263 = vector.broadcast %262 : vector<2x4x1xf32> to vector<2x4x32xf32>
    %264 = arith.addf %258, %263 : vector<2x4x32xf32>
    %cst_104 = arith.constant dense<0xFF800000> : vector<2x32xf32>
    %265 = vector.multi_reduction <maximumf>, %264, %cst_104 [1] : vector<2x4x32xf32> to vector<2x32xf32>
    %266 = vector.shape_cast %265 : vector<2x32xf32> to vector<2x1x32xf32>
    %267 = vector.broadcast %266 : vector<2x1x32xf32> to vector<2x4x32xf32>
    %268 = arith.subf %264, %267 : vector<2x4x32xf32>
    %269 = math.exp %268 : vector<2x4x32xf32>
    %cst_105 = arith.constant dense<0.000000e+00> : vector<2x32xf32>
    %270 = vector.multi_reduction <add>, %269, %cst_105 [1] : vector<2x4x32xf32> to vector<2x32xf32>
    %271 = vector.shape_cast %270 : vector<2x32xf32> to vector<2x1x32xf32>
    %272 = vector.broadcast %271 : vector<2x1x32xf32> to vector<2x4x32xf32>
    %273 = arith.divf %269, %272 : vector<2x4x32xf32>
    %274 = arith.mulf %273, %250 : vector<2x4x32xf32>
    %cst_106 = arith.constant dense<0.000000e+00> : vector<2x32xf32>
    %275 = vector.multi_reduction <add>, %274, %cst_106 [1] : vector<2x4x32xf32> to vector<2x32xf32>
    %c0_107 = arith.constant 0 : index
    %c0_108 = arith.constant 0 : index
    %276 = vector.load %arg14[%c0_107, %c0_108] : memref<32x1xf32, #tpu.memory_space<vmem>>, vector<32x1xf32>
    %cst_109 = arith.constant dense<0.000000e+00> : vector<2x1xf32>
    %277 = tpu.matmul %275, %276, %cst_109 {dimension_numbers = #tpu.dot_dimension_numbers<[1], [0], [0], [1], [0, 0, 1, 1], [], []>} : vector<2x32xf32>, vector<32x1xf32>, vector<2x1xf32> -> vector<2x1xf32>
    %c0_110 = arith.constant 0 : index
    %c0_111 = arith.constant 0 : index
    %278 = vector.load %arg15[%c0_110, %c0_111] : memref<1x1xf32, #tpu.memory_space<vmem>>, vector<1x1xf32>
    %279 = vector.broadcast %278 : vector<1x1xf32> to vector<2x1xf32>
    %280 = arith.addf %277, %279 : vector<2x1xf32>
    %281 = arith.negf %280 : vector<2x1xf32>
    %282 = math.exp %281 : vector<2x1xf32>
    %cst_112 = arith.constant 1.000000e+00 : f32
    %283 = vector.broadcast %cst_112 : f32 to vector<2x1xf32>
    %284 = arith.addf %283, %282 : vector<2x1xf32>
    %285 = arith.divf %283, %284 : vector<2x1xf32>
    %c0_113 = arith.constant 0 : index
    %c0_114 = arith.constant 0 : index
    %286 = vector.load %arg16[%c0_113, %c0_114] : memref<2x1xf32, #tpu.memory_space<vmem>>, vector<2x1xf32>
    tpu.vector_store %arg16[%c0_113, %c0_114], %285 {strides = array<i32>} : memref<2x1xf32, #tpu.memory_space<vmem>>, vector<2x1xf32>,
    return
  }
  func.func @transform_0(%arg0: i32) -> (i32, i32) {
    %c0_i32 = arith.constant 0 : i32
    %c0_i32_0 = arith.constant 0 : i32
    %c0_i32_1 = arith.constant 0 : i32
    return %c0_i32, %c0_i32_0 : i32, i32
  }
  func.func @transform_1(%arg0: i32) -> (i32, i32, i32) {
    %c0_i32 = arith.constant 0 : i32
    %c0_i32_0 = arith.constant 0 : i32
    %c0_i32_1 = arith.constant 0 : i32
    %c0_i32_2 = arith.constant 0 : i32
    return %c0_i32, %c0_i32_0, %c0_i32_1 : i32, i32, i32
  }
  func.func @transform_2(%arg0: i32) -> (i32, i32, i32) {
    %c0_i32 = arith.constant 0 : i32
    %c0_i32_0 = arith.constant 0 : i32
    %c0_i32_1 = arith.constant 0 : i32
    %c0_i32_2 = arith.constant 0 : i32
    return %c0_i32, %c0_i32_0, %c0_i32_1 : i32, i32, i32
  }
  func.func @transform_3(%arg0: i32) -> (i32, i32) {
    %c0_i32 = arith.constant 0 : i32
    %c0_i32_0 = arith.constant 0 : i32
    %c0_i32_1 = arith.constant 0 : i32
    return %c0_i32, %c0_i32_0 : i32, i32
  }
  func.func @transform_4(%arg0: i32) -> (i32, i32, i32) {
    %c0_i32 = arith.constant 0 : i32
    %c0_i32_0 = arith.constant 0 : i32
    %c0_i32_1 = arith.constant 0 : i32
    %c0_i32_2 = arith.constant 0 : i32
    return %c0_i32, %c0_i32_0, %c0_i32_1 : i32, i32, i32
  }
  func.func @transform_5(%arg0: i32) -> (i32, i32) {
    %c0_i32 = arith.constant 0 : i32
    %c0_i32_0 = arith.constant 0 : i32
    %c0_i32_1 = arith.constant 0 : i32
    return %c0_i32, %c0_i32_0 : i32, i32
  }
  func.func @transform_6(%arg0: i32) -> (i32, i32) {
    %c0_i32 = arith.constant 0 : i32
    %c0_i32_0 = arith.constant 0 : i32
    %c0_i32_1 = arith.constant 0 : i32
    return %c0_i32, %c0_i32_0 : i32, i32
  }
  func.func @transform_7(%arg0: i32) -> (i32, i32) {
    %c0_i32 = arith.constant 0 : i32
    %c0_i32_0 = arith.constant 0 : i32
    %c0_i32_1 = arith.constant 0 : i32
    return %c0_i32, %c0_i32_0 : i32, i32
  }
  func.func @transform_8(%arg0: i32) -> (i32, i32) {
    %c0_i32 = arith.constant 0 : i32
    %c0_i32_0 = arith.constant 0 : i32
    %c0_i32_1 = arith.constant 0 : i32
    return %c0_i32, %c0_i32_0 : i32, i32
  }
  func.func @transform_9(%arg0: i32) -> (i32, i32) {
    %c0_i32 = arith.constant 0 : i32
    %c0_i32_0 = arith.constant 0 : i32
    %c0_i32_1 = arith.constant 0 : i32
    return %c0_i32, %c0_i32_0 : i32, i32
  }
  func.func @transform_10(%arg0: i32) -> (i32, i32) {
    %c0_i32 = arith.constant 0 : i32
    %c0_i32_0 = arith.constant 0 : i32
    %c0_i32_1 = arith.constant 0 : i32
    return %c0_i32, %c0_i32_0 : i32, i32
  }
  func.func @transform_11(%arg0: i32) -> (i32, i32) {
    %c0_i32 = arith.constant 0 : i32
    %c0_i32_0 = arith.constant 0 : i32
    %c0_i32_1 = arith.constant 0 : i32
    return %c0_i32, %c0_i32_0 : i32, i32
  }
  func.func @transform_12(%arg0: i32) -> (i32, i32) {
    %c0_i32 = arith.constant 0 : i32
    %c0_i32_0 = arith.constant 0 : i32
    %c0_i32_1 = arith.constant 0 : i32
    return %c0_i32, %c0_i32_0 : i32, i32
  }
  func.func @transform_13(%arg0: i32) -> (i32, i32) {
    %c0_i32 = arith.constant 0 : i32
    %c0_i32_0 = arith.constant 0 : i32
    %c0_i32_1 = arith.constant 0 : i32
    return %c0_i32, %c0_i32_0 : i32, i32
  }
  func.func @transform_14(%arg0: i32) -> (i32, i32) {
    %c0_i32 = arith.constant 0 : i32
    %c0_i32_0 = arith.constant 0 : i32
    %c0_i32_1 = arith.constant 0 : i32
    return %c0_i32, %c0_i32_0 : i32, i32
  }
  func.func @transform_15(%arg0: i32) -> (i32, i32) {
    %c0_i32 = arith.constant 0 : i32
    %c0_i32_0 = arith.constant 0 : i32
    %c0_i32_1 = arith.constant 0 : i32
    return %c0_i32, %c0_i32_0 : i32, i32
  }
}

</mosaic_0001>

<bundles_post_ra>
// kernel: baseline_forward.1
= control target key start
LH: loop header
LB: loop body
LE: loop exit
PB: predicated region body
PF: predicated region fallthrough
CT: control target
= control target key end

     0   :  { %v3519_v0 = vmov 0   ;;  %vm202_vm0 = vcmask 1041408   ;;  %v66_v22 = vlaneseq  ;;  %vm159_vm1 = vcmask 408576   ;;  %s3522_s30 = smov 64   ;;  %s4487_s0 = inlined_call_operand.vmem [shape: s32[112,1], index: 0, kind: input, shape index: {}]   ;;  %s4488_s3 = inlined_call_operand.vmem [shape: f32[50,16], index: 3, kind: input, shape index: {}]   ;;  %s4489_s4 = inlined_call_operand.vmem [shape: f32[3,16,32], index: 4, kind: input, shape index: {}]   ;;  %s4490_s6 = inlined_call_operand.vmem [shape: f32[32,32], index: 6, kind: input, shape index: {}]   ;;  %s4491_s5 = inlined_call_operand.vmem [shape: f32[1,32], index: 5, kind: input, shape index: {}]   ;;  %s4492_s7 = inlined_call_operand.vmem [shape: f32[1,32], index: 7, kind: input, shape index: {}]   ;;  %s4493_s2 = inlined_call_operand.vmem [shape: f32[4,2,7], index: 2, kind: input, shape index: {}]   ;;  %s4494_s9 = inlined_call_operand.vmem [shape: f32[32,128], index: 9, kind: input, shape index: {}]   ;;  %s4495_s8 = inlined_call_operand.vmem [shape: f32[32,128], index: 8, kind: input, shape index: {}]   ;;  %s4496_s10 = inlined_call_operand.vmem [shape: f32[1,128], index: 10, kind: input, shape index: {}]   ;;  %s4497_s1 = inlined_call_operand.vmem [shape: f32[2,4,1], index: 1, kind: input, shape index: {}]   ;;  %s4498_s11 = inlined_call_operand.vmem [shape: f32[32,32], index: 11, kind: input, shape index: {}]   ;;  %s4499_s13 = inlined_call_operand.vmem [shape: f32[32,1], index: 13, kind: input, shape index: {}]   ;;  %s4500_s14 = inlined_call_operand.<no memory space> [shape: f32[1,1], index: 14, kind: input, shape index: {}]   ;;  %s4501_s12 = inlined_call_operand.vmem [shape: f32[1,32], index: 12, kind: input, shape index: {}]   ;;  %s4502_s15 = inlined_call_operand.vmem [shape: f32[2,1], index: 15, kind: output, shape index: {}]  }
   0x1   :  { %3404 = vset.pattern.permute.xlu1 %v3519_v0  ;;  %3403 = vset.pattern.permute.xlu0 %v3519_v0  ;;  %v54_v1 = vld [vmem:[%s4487_s0 + $0x10] sm:$0xff]  ;;  %v52_v2 = vld [vmem:[%s4487_s0] sm:$0xff]  ;;  %v55_v3 = vld [vmem:[%s4487_s0 + $0x18] sm:$0xff]  ;;  %v3520_v26 = vmov 0.0  }
   0x2   :  { %75 = vperm.xlu1 %3404, %v54_v1   ;;  %69 = vperm.xlu0 %3403, %v52_v2   ;;  %v53_v4 = vld [vmem:[%s4487_s0 + $0x8] sm:$0xff]  ;;  %v158_v5 = vld [vmem:[%s4488_s3 + $0x30] sm:$0x3]  ;;  %v56_v8 = vld [vmem:[%s4487_s0 + $0x20] sm:$0xff]  ;;  %v67_v23 = vand.u32 127, %v66_v22 }
   0x3   :  { %v157_v6 = vld [vmem:[%s4488_s3 + $0x28] sm:$0xff]  ;;  %3128 = vmatprep.subr.msk.mxu0 %vm202_vm0, %v158_v5  ;;  %v156_v9 = vld [vmem:[%s4488_s3 + $0x20] sm:$0xff]  ;;  %v59_v10 = vld [vmem:[%s4487_s0 + $0x38] sm:$0xff] }
   0x4   :  { %v57_v7 = vld [vmem:[%s4487_s0 + $0x28] sm:$0xff]  ;;  %3129 = vmatpush3.msk.msra.mxu0 %vm202_vm0, %v158_v5  ;;  %v58_v11 = vld [vmem:[%s4487_s0 + $0x30] sm:$0xff]  ;;  %v155_v12 = vld [vmem:[%s4488_s3 + $0x18] sm:$0xff]  ;;  %vm349_vm0 = vcmask 130048  }
   0x5   :  { %3130 = vmatprep.subr.mxu0 %v157_v6  ;;  %v154_v13 = vld [vmem:[%s4488_s3 + $0x10] sm:$0xff]  ;;  %v61_v14 = vld [vmem:[%s4487_s0 + $0x48] sm:$0xff]  ;;  %v60_v15 = vld [vmem:[%s4487_s0 + $0x40] sm:$0xff] }
   0x6   :  { %78 = vperm.xlu1 %3404, %v55_v3   ;;  %72 = vperm.xlu0 %3403, %v53_v4   ;;  %v153_v16 = vld [vmem:[%s4488_s3 + $0x8] sm:$0xff]  ;;  %v63_v17 = vld [vmem:[%s4487_s0 + $0x58] sm:$0xff]  ;;  %v62_v18 = vld [vmem:[%s4487_s0 + $0x50] sm:$0xff] }
   0x7   :  { %3131 = vmatpush3.msra.mxu0 %v157_v6  ;;  %v152_v19 = vld [vmem:[%s4488_s3] sm:$0xff]  ;;  %v65_v20 = vld [vmem:[%s4487_s0 + $0x68] sm:$0xff]  ;;  %v2888_v57 = vld [vmem:[%s4489_s4 + $0x18] sm:$0xff] }
   0x8   :  { %3132 = vmatprep.subr.mxu0 %v156_v9  ;;  %v64_v21 = vld [vmem:[%s4487_s0 + $0x60] sm:$0xff]  ;;  %v348_v53 = vld [vmem:[%s4489_s4 + $0x8] sm:$0xff]  ;;  %v2887_v60 = vld [vmem:[%s4489_s4 + $0x10] sm:$0xff] }
   0x9   :  { %3133 = vmatpush3.msra.mxu0 %v156_v9  ;;  %v2918_v54 = vld [vmem:[%s4489_s4 + $0x28] sm:$0xff]  ;;  %3163 = vmatprep.subr.mxu1 %v348_v53  ;;  %v347_v55 = vld [vmem:[%s4489_s4] sm:$0xff]  ;;  %v954_v9 = vld [vmem:[%s4490_s6 + $0x18] sm:$0xff] }
   0xa   :  { %84 = vperm.xlu1 %3404, %v57_v7   ;;  %81 = vperm.xlu0 %3403, %v56_v8   ;;  %v2917_v56 = vld [vmem:[%s4489_s4 + $0x20] sm:$0xff] }
   0xb   :  { %3134 = vmatprep.subr.mxu0 %v155_v12  ;;  %3164 = vmatpush3.msra.mxu1 %v348_v53 }
   0xc   :  { %3135 = vmatpush3.msra.mxu0 %v155_v12  ;;  %3165 = vmatprep.subr.mxu1 %v347_v55  ;;  %v951_v12 = vld [vmem:[%s4490_s6] sm:$0xff] }
   0xd   :  { %3136 = vmatprep.subr.mxu0 %v154_v13  ;;  %3166 = vmatpush3.msra.mxu1 %v347_v55 }
   0xe   :  { %90 = vperm.xlu1 %3404, %v59_v10   ;;  %87 = vperm.xlu0 %3403, %v58_v11   ;;  %v953_v10 = vld [vmem:[%s4490_s6 + $0x10] sm:$0xff]  ;;  %v952_v11 = vld [vmem:[%s4490_s6 + $0x8] sm:$0xff] }
   0xf   :  { %3137 = vmatpush3.msra.mxu0 %v154_v13  ;;  %3188 = vmatprep.subr.mxu1 %v2888_v57 }
  0x10   :  { %3138 = vmatprep.subr.mxu0 %v153_v16 }
  0x11   :  { %3139 = vmatpush3.msra.mxu0 %v153_v16 }
  0x12   :  { %96 = vperm.xlu1 %3404, %v61_v14   ;;  %93 = vperm.xlu0 %3403, %v60_v15  }
  0x13   :  { %3140 = vmatprep.subr.mxu0 %v152_v19 }
  0x14   :  { %3141 = vmatpush3.msra.mxu0 %v152_v19 }
  0x15   :  { %3213 = vmatprep.subr.mxu0 %v2918_v54 }
  0x16   :  { %102 = vperm.xlu1 %3404, %v63_v17   ;;  %99 = vperm.xlu0 %3403, %v62_v18  }
  0x1a   :  { %108 = vperm.xlu1 %3404, %v65_v20   ;;  %105 = vperm.xlu0 %3403, %v64_v21  }
  0x7d   :  { %v76_v24 = vpop.permute.xlu1 %75  ;;  %v70_v25 = vpop.permute.xlu0 %69 }
  0x7e   :  { %vm110_vm2 = vcmp.eq.s32.totalorder %v70_v25, %v67_v23  ;;  %vm112_vm3 = vcmp.eq.s32.totalorder %v76_v24, %v67_v23 }
  0x7f   :  { %v2858_v27 = vsel %vm110_vm2, 1.0, %v3520_v26  ;;  %v2860_v30 = vsel %vm112_vm3, 1.0, %v3520_v26 }
  0x80   :  { %3142 = vmatprep.mubr.msk.f32.mxu0 %vm159_vm1, %v2858_v27 }
  0x81   :  { %v79_v28 = vpop.permute.xlu1 %78  ;;  %v73_v29 = vpop.permute.xlu0 %72 }
  0x82   :  { %vm111_vm4 = vcmp.eq.s32.totalorder %v73_v29, %v67_v23  ;;  %vm113_vm5 = vcmp.eq.s32.totalorder %v79_v28, %v67_v23 }
  0x83   :  { %v2859_v31 = vsel %vm111_vm4, 1.0, %v3520_v26  ;;  %v2861_v34 = vsel %vm113_vm5, 1.0, %v3520_v26  ;;  %vm962_vm5 = vcmask 261120  }
  0x84   :  { %3143 = vmatmul.mubr.msk.f32.vlgmr.msra.gmra.mxu0 %vm159_vm1, %v2859_v31 }
  0x85   :  { %v85_v32 = vpop.permute.xlu1 %84  ;;  %3145 = vmatprep.mubr.msk.f32.mxu0 %vm159_vm1, %v2860_v30  ;;  %v82_v33 = vpop.permute.xlu0 %81  ;;  %3214 = vmatpush3.msra.mxu0 %v2918_v54  ;;  %v3788_v30 = vshrl.u32 %v66_v22, 7 }
  0x86   :  { %vm114_vm6 = vcmp.eq.s32.totalorder %v82_v33, %v67_v23  ;;  %vm115_vm7 = vcmp.eq.s32.totalorder %v85_v32, %v67_v23  ;;  %3215 = vmatprep.subr.mxu0 %v2917_v56 }
  0x87   :  { %v2862_v35 = vsel %vm114_vm6, 1.0, %v3520_v26  ;;  %v2863_v38 = vsel %vm115_vm7, 1.0, %v3520_v26  ;;  %3216 = vmatpush3.msra.mxu0 %v2917_v56  ;;  %vm865_vm2 = vcmp.lt.s32.totalorder %v3788_v30, 7  ;;  %vm3521_vm6 = vmmov 0  }
  0x88   :  { %3146 = vmatmul.mubr.msk.f32.gmra.mxu0 %vm159_vm1, %v2861_v34  ;;  %3267 = vmatprep.subr.mxu0 %v3520_v26  ;;  %v343_v34 = vadd.s32 8, %v3788_v30  ;;  %vm1414_vm7 = vcmask 1041409  }
  0x89   :  { %v91_v36 = vpop.permute.xlu1 %90  ;;  %3148 = vmatprep.mubr.msk.f32.mxu0 %vm159_vm1, %v2862_v35  ;;  %v88_v37 = vpop.permute.xlu0 %87 }
  0x8a   :  { %vm116_vm8 = vcmp.eq.s32.totalorder %v88_v37, %v67_v23  ;;  %vm117_vm9 = vcmp.eq.s32.totalorder %v91_v36, %v67_v23 }
  0x8b   :  { %v2864_v39 = vsel %vm116_vm8, 1.0, %v3520_v26  ;;  %v2865_v42 = vsel %vm117_vm9, 1.0, %v3520_v26  ;;  %vm1416_vm8 = vcmask 1042434   ;;  %vm1418_vm9 = vcmask 1043459  }
  0x8c   :  { %3149 = vmatmul.mubr.msk.f32.gmra.mxu0 %vm159_vm1, %v2863_v38  ;;  %v3803_v38 = vadd.s32 1, %v343_v34 }
  0x8d   :  { %v97_v40 = vpop.permute.xlu1 %96  ;;  %3151 = vmatprep.mubr.msk.f32.mxu0 %vm159_vm1, %v2864_v39  ;;  %v94_v41 = vpop.permute.xlu0 %93  ;;  %v3806_v39 = vadd.s32 4294967295, %v3788_v30 }
  0x8e   :  { %vm118_vm10 = vcmp.eq.s32.totalorder %v94_v41, %v67_v23  ;;  %vm119_vm11 = vcmp.eq.s32.totalorder %v97_v40, %v67_v23  ;;  %vm885_vm3 = vcmp.lt.s32.totalorder %v3803_v38, 16 }
  0x8f   :  { %v2866_v43 = vsel %vm118_vm10, 1.0, %v3520_v26  ;;  %v2867_v46 = vsel %vm119_vm11, 1.0, %v3520_v26  ;;  %vm558_vm4 = vcmp.ge.s32.totalorder %v3806_v39, 0  ;;  %vm1420_vm10 = vcmask 1044484  }
  0x90   :  { %3152 = vmatmul.mubr.msk.f32.gmra.mxu0 %vm159_vm1, %v2865_v42  ;;  %vm1422_vm11 = vcmask 1045509  }
  0x91   :  { %v103_v44 = vpop.permute.xlu1 %102  ;;  %3154 = vmatprep.mubr.msk.f32.mxu0 %vm159_vm1, %v2866_v43  ;;  %v100_v45 = vpop.permute.xlu0 %99 }
  0x92   :  { %vm120_vm12 = vcmp.eq.s32.totalorder %v100_v45, %v67_v23  ;;  %vm121_vm13 = vcmp.eq.s32.totalorder %v103_v44, %v67_v23 }
  0x93   :  { %v2868_v47 = vsel %vm120_vm12, 1.0, %v3520_v26  ;;  %v2869_v50 = vsel %vm121_vm13, 1.0, %v3520_v26  ;;  %vm1424_vm12 = vcmask 1046534   ;;  %vm1430_vm13 = vcmask 1046528  }
  0x94   :  { %3155 = vmatmul.mubr.msk.f32.gmra.mxu0 %vm159_vm1, %v2867_v46 }
  0x95   :  { %v109_v48 = vpop.permute.xlu1 %108  ;;  %3157 = vmatprep.mubr.msk.f32.mxu0 %vm159_vm1, %v2868_v47  ;;  %v106_v49 = vpop.permute.xlu0 %105 }
  0x96   :  { %vm122_vm14 = vcmp.eq.s32.totalorder %v106_v49, %v67_v23  ;;  %vm123_vm15 = vcmp.eq.s32.totalorder %v109_v48, %v67_v23 }
  0x97   :  { %v2870_v51 = vsel %vm122_vm14, 1.0, %v3520_v26  ;;  %v2871_v52 = vsel %vm123_vm15, 1.0, %v3520_v26  ;;  %vm1426_vm14 = vcmask 56320   ;;  %vm1689_vm15 = vcmp.eq.s32.totalorder %v3788_v30, 0 }
  0x98   :  { %3158 = vmatmul.mubr.msk.f32.gmra.mxu0 %vm159_vm1, %v2869_v50 }
  0x99   :  { %3160 = vmatprep.mubr.msk.f32.mxu0 %vm159_vm1, %v2870_v51 }
  0x9c   :  { %3161 = vmatmul.mubr.msk.f32.gmra.mxu0 %vm159_vm1, %v2871_v52  ;;  %vm541_vm1 = vcmp.lt.s32.totalorder %v3788_v30, 1 }
 0x144   :  { %v3144_v58 = vpop.f32.mrf.mxu0 }
 0x146   :  { %v272_v59 = vpop.f32.mrf.mxu0 }
 0x147   :  { %3167 = vmatprep.mubr.msk.f32.mxu1 %vm349_vm0, %v272_v59  ;;  %3217 = vmatprep.mubr.msk.f32.mxu0 %vm349_vm0, %v272_v59 }
 0x148   :  { %v3147_v61 = vpop.f32.mrf.mxu0  ;;  %3168 = vmatmul.mubr.msk.f32.vlgmr.msra.gmra.mxu1 %vm349_vm0, %v3144_v58  ;;  %3218 = vmatmul.mubr.msk.f32.vlgmr.msra.gmra.mxu0 %vm349_vm0, %v3144_v58 }
 0x149   :  { %3189 = vmatpush3.msra.mxu1 %v2888_v57 }
 0x14a   :  { %v282_v62 = vpop.f32.mrf.mxu0  ;;  %3190 = vmatprep.subr.mxu1 %v2887_v60 }
 0x14b   :  { %3170 = vmatprep.mubr.msk.f32.mxu1 %vm349_vm0, %v282_v62  ;;  %3220 = vmatprep.mubr.msk.f32.mxu0 %vm349_vm0, %v282_v62 }
 0x14c   :  { %v3150_v63 = vpop.f32.mrf.mxu0  ;;  %3171 = vmatmul.mubr.msk.f32.gmra.mxu1 %vm349_vm0, %v3147_v61  ;;  %3221 = vmatmul.mubr.msk.f32.gmra.mxu0 %vm349_vm0, %v3147_v61 }
 0x14d   :  { %3191 = vmatpush3.msra.mxu1 %v2887_v60 }
 0x14e   :  { %v292_v0 = vpop.f32.mrf.mxu0  ;;  %3238 = vmatprep.subr.mxu1 %v954_v9 }
 0x14f   :  { %3173 = vmatprep.mubr.msk.f32.mxu1 %vm349_vm0, %v292_v0  ;;  %3223 = vmatprep.mubr.msk.f32.mxu0 %vm349_vm0, %v292_v0 }
 0x150   :  { %v3153_v1 = vpop.f32.mrf.mxu0  ;;  %3174 = vmatmul.mubr.msk.f32.gmra.mxu1 %vm349_vm0, %v3150_v63  ;;  %3224 = vmatmul.mubr.msk.f32.gmra.mxu0 %vm349_vm0, %v3150_v63 }
 0x152   :  { %v302_v2 = vpop.f32.mrf.mxu0 }
 0x153   :  { %3176 = vmatprep.mubr.msk.f32.mxu1 %vm349_vm0, %v302_v2  ;;  %3226 = vmatprep.mubr.msk.f32.mxu0 %vm349_vm0, %v302_v2 }
 0x154   :  { %v3156_v3 = vpop.f32.mrf.mxu0  ;;  %3177 = vmatmul.mubr.msk.f32.gmra.mxu1 %vm349_vm0, %v3153_v1  ;;  %3227 = vmatmul.mubr.msk.f32.gmra.mxu0 %vm349_vm0, %v3153_v1 }
 0x156   :  { %v312_v4 = vpop.f32.mrf.mxu0 }
 0x157   :  { %3179 = vmatprep.mubr.msk.f32.mxu1 %vm349_vm0, %v312_v4  ;;  %3229 = vmatprep.mubr.msk.f32.mxu0 %vm349_vm0, %v312_v4 }
 0x158   :  { %v3159_v5 = vpop.f32.mrf.mxu0  ;;  %3180 = vmatmul.mubr.msk.f32.gmra.mxu1 %vm349_vm0, %v3156_v3  ;;  %3230 = vmatmul.mubr.msk.f32.gmra.mxu0 %vm349_vm0, %v3156_v3 }
 0x15a   :  { %v322_v6 = vpop.f32.mrf.mxu0 }
 0x15b   :  { %3182 = vmatprep.mubr.msk.f32.mxu1 %vm349_vm0, %v322_v6  ;;  %3232 = vmatprep.mubr.msk.f32.mxu0 %vm349_vm0, %v322_v6 }
 0x15c   :  { %v3162_v7 = vpop.f32.mrf.mxu0  ;;  %3183 = vmatmul.mubr.msk.f32.gmra.mxu1 %vm349_vm0, %v3159_v5  ;;  %3233 = vmatmul.mubr.msk.f32.gmra.mxu0 %vm349_vm0, %v3159_v5 }
 0x15e   :  { %v332_v8 = vpop.f32.mrf.mxu0 }
 0x15f   :  { %3185 = vmatprep.mubr.msk.f32.mxu1 %vm349_vm0, %v332_v8  ;;  %3235 = vmatprep.mubr.msk.f32.mxu0 %vm349_vm0, %v332_v8 }
 0x160   :  { %3186 = vmatmul.mubr.msk.f32.gmra.mxu1 %vm349_vm0, %v3162_v7  ;;  %3236 = vmatmul.mubr.msk.f32.gmra.mxu0 %vm349_vm0, %v3162_v7 }
 0x161   :  { %3192 = vmatprep.mubr.msk.f32.mxu1 %vm349_vm0, %v272_v59  ;;  %3269 = vmatprep.mubr.msk.f32.mxu0 %vm3521_vm6, %v3520_v26 }
 0x164   :  { %3193 = vmatmul.mubr.msk.f32.vlgmr.msra.gmra.mxu1 %vm349_vm0, %v3144_v58 }
 0x165   :  { %3195 = vmatprep.mubr.msk.f32.mxu1 %vm349_vm0, %v282_v62  ;;  %3239 = vmatpush3.msra.mxu1 %v954_v9 }
 0x166   :  { %3240 = vmatprep.subr.mxu1 %v953_v10 }
 0x167   :  { %3241 = vmatpush3.msra.mxu1 %v953_v10 }
 0x168   :  { %3196 = vmatmul.mubr.msk.f32.gmra.mxu1 %vm349_vm0, %v3147_v61  ;;  %3242 = vmatprep.subr.mxu1 %v952_v11 }
 0x169   :  { %3198 = vmatprep.mubr.msk.f32.mxu1 %vm349_vm0, %v292_v0  ;;  %3243 = vmatpush3.msra.mxu1 %v952_v11 }
 0x16a   :  { %3244 = vmatprep.subr.mxu1 %v951_v12 }
 0x16b   :  { %3245 = vmatpush3.msra.mxu1 %v951_v12 }
 0x16c   :  { %3199 = vmatmul.mubr.msk.f32.gmra.mxu1 %vm349_vm0, %v3150_v63  ;;  %3294 = vmatprep.subr.mxu1 %v3520_v26 }
 0x16d   :  { %3201 = vmatprep.mubr.msk.f32.mxu1 %vm349_vm0, %v302_v2 }
 0x170   :  { %3202 = vmatmul.mubr.msk.f32.gmra.mxu1 %vm349_vm0, %v3153_v1 }
 0x171   :  { %3204 = vmatprep.mubr.msk.f32.mxu1 %vm349_vm0, %v312_v4 }
 0x174   :  { %3205 = vmatmul.mubr.msk.f32.gmra.mxu1 %vm349_vm0, %v3156_v3 }
 0x175   :  { %3207 = vmatprep.mubr.msk.f32.mxu1 %vm349_vm0, %v322_v6 }
 0x178   :  { %3208 = vmatmul.mubr.msk.f32.gmra.mxu1 %vm349_vm0, %v3159_v5 }
 0x179   :  { %3210 = vmatprep.mubr.msk.f32.mxu1 %vm349_vm0, %v332_v8 }
 0x17c   :  { %3211 = vmatmul.mubr.msk.f32.gmra.mxu1 %vm349_vm0, %v3162_v7  ;;  %v3854_v7 = vld [vmem:[%s4491_s5] ss:$0 sm:$0xff]  ;;  %s3523_s5 = smov 32   ;;  %vm1976_vm0 = vcmp.eq.s32.totalorder %v3788_v30, 1 }
 0x208   :  { %v3169_v13 = vpop.f32.mrf.mxu1  ;;  %v3219_v14 = vpop.f32.mrf.mxu0 }
 0x209   :  { %v852_v44 = vrot.slane %v3219_v14, 1  ;;  %v528_v47 = vrot.slane %v3169_v13, 7 }
 0x20a   :  { %v458_v15 = vpop.f32.mrf.mxu1  ;;  %v3771_v16 = vpop.f32.mrf.mxu0 }
 0x20b   :  { %v527_v40 = vrot.slane %v458_v15, 7  ;;  %v851_v41 = vrot.slane %v3771_v16, 1 }
 0x20c   :  { %v3172_v17 = vpop.f32.mrf.mxu1  ;;  %v3222_v18 = vpop.f32.mrf.mxu0 }
 0x20d   :  { %v530_v50 = vrot.slane %v3172_v17, 7  ;;  %v854_v54 = vrot.slane %v3222_v18, 1  ;;  %v554_v57 = vsel %vm541_vm1, %v527_v40, %v528_v47  ;;  %v878_v59 = vsel %vm865_vm2, %v851_v41, %v852_v44 }
 0x20e   :  { %v468_v19 = vpop.f32.mrf.mxu1  ;;  %v792_v20 = vpop.f32.mrf.mxu0 }
 0x20f   :  { %v853_v22 = vrot.slane %v792_v20, 1  ;;  %v529_v45 = vrot.slane %v468_v19, 7 }
 0x210   :  { %v3773_v21 = vpop.f32.mrf.mxu1  ;;  %v3775_v23 = vpop.f32.mrf.mxu0 }
 0x211   :  { %v877_v52 = vsel %vm865_vm2, %v852_v44, %v853_v22  ;;  %v532_v55 = vrot.slane %v3773_v21, 7  ;;  %v856_v60 = vrot.slane %v3775_v23, 1  ;;  %v552_v62 = vsel %vm541_vm1, %v529_v45, %v530_v50 }
 0x212   :  { %v3777_v24 = vpop.f32.mrf.mxu1  ;;  %v3779_v25 = vpop.f32.mrf.mxu0  ;;  %v553_v63 = vsel %vm541_vm1, %v528_v47, %v529_v45  ;;  %v889_v0 = vsel %vm885_vm3, %v877_v52, 0.0  ;;  %v876_v4 = vsel %vm865_vm2, %v853_v22, %v854_v54 }
 0x213   :  { %v855_v48 = vrot.slane %v3779_v25, 1  ;;  %v531_v51 = vrot.slane %v3777_v24, 7  ;;  %v566_v15 = vsel %vm558_vm4, %v553_v63, 0.0 }
 0x214   :  { %v3781_v27 = vpop.f32.mrf.mxu1  ;;  %v3783_v28 = vpop.f32.mrf.mxu0 }
 0x215   :  { %v875_v3 = vsel %vm865_vm2, %v854_v54, %v855_v48  ;;  %v551_v9 = vsel %vm541_vm1, %v530_v50, %v531_v51  ;;  %v534_v10 = vrot.slane %v3781_v27, 7  ;;  %v858_v11 = vrot.slane %v3783_v28, 1 }
 0x216   :  { %v3785_v29 = vpop.f32.mrf.mxu1  ;;  %v3790_v31 = vpop.f32.mrf.mxu0  ;;  %v550_v20 = vsel %vm541_vm1, %v531_v51, %v532_v55  ;;  %v891_v23 = vsel %vm885_vm3, %v875_v3, 0.0  ;;  %v568_v25 = vsel %vm558_vm4, %v551_v9, 0.0  ;;  %v874_v27 = vsel %vm865_vm2, %v855_v48, %v856_v60 }
 0x217   :  { %v857_v5 = vrot.slane %v3790_v31, 1  ;;  %v533_v12 = vrot.slane %v3785_v29, 7 }
 0x218   :  { %v3792_v32 = vpop.f32.mrf.mxu1  ;;  %v3797_v35 = vpop.f32.mrf.mxu0 }
 0x219   :  { %v873_v34 = vsel %vm865_vm2, %v856_v60, %v857_v5  ;;  %v536_v22 = vrot.slane %v3792_v32, 7  ;;  %v549_v50 = vsel %vm541_vm1, %v532_v55, %v533_v12 }
 0x21a   :  { %v3794_v33 = vpop.f32.mrf.mxu1  ;;  %v3809_v42 = vpop.f32.mrf.mxu0  ;;  %v570_v63 = vsel %vm558_vm4, %v549_v50, 0.0 }
 0x21b   :  { %v859_v17 = vrot.slane %v3809_v42, 1  ;;  %v535_v44 = vrot.slane %v3794_v33, 7  ;;  %v893_v33 = vsel %vm885_vm3, %v873_v34, 0.0 }
 0x21c   :  { %v3799_v36 = vpop.f32.mrf.mxu1  ;;  %v3829_v56 = vpop.f32.mrf.mxu0 }
 0x21d   :  { %v871_v52 = vsel %vm865_vm2, %v858_v11, %v859_v17  ;;  %v547_v3 = vsel %vm541_vm1, %v534_v10, %v535_v44 }
 0x21e   :  { %v3801_v37 = vpop.f32.mrf.mxu1  ;;  %v3861_v13 = vpop.f32.mrf.mxu0 }
 0x21f   :  { %v861_v32 = vrot.slane %v3861_v13, 1 }
 0x220   :  { %v3811_v43 = vpop.f32.mrf.mxu1  ;;  %v3881_v45 = vpop.f32.mrf.mxu0 }
 0x221   :  { %v540_v46 = vrot.slane %v3811_v43, 7 }
 0x222   :  { %v3817_v49 = vpop.f32.mrf.mxu1  ;;  %v3897_v60 = vpop.f32.mrf.mxu0 }
 0x223   :  { %v555_v53 = vsel %vm541_vm1, %v540_v46, %v527_v40  ;;  %v860_v40 = vrot.slane %v3797_v35, 1  ;;  %v863_v9 = vrot.slane %v3897_v60, 1 }
 0x224   :  { %v3194_v58 = vpop.f32.mrf.mxu1  ;;  %v564_v1 = vsel %vm558_vm4, %v555_v53, 0.0 }
 0x225   :  { %v650_v61 = vadd.f32 %v3194_v58, %v554_v57  ;;  %v548_v58 = vsel %vm541_vm1, %v533_v12, %v534_v10  ;;  %v864_v10 = vrot.slane %v3881_v45, 1  ;;  %v870_v34 = vsel %vm865_vm2, %v859_v17, %v860_v40 }
 0x226   :  { %v644_v2 = vpop.f32.mrf.mxu1 }
 0x227   :  { %v903_v6 = vadd.f32 %v889_v0, %v650_v61  ;;  %v645_v8 = vadd.f32 %v644_v2, %v564_v1  ;;  %v872_v0 = vsel %vm865_vm2, %v857_v5, %v858_v11 }
 0x228   :  { %v3197_v14 = vpop.f32.mrf.mxu1 }
 0x229   :  { %v902_v18 = vadd.f32 %v878_v59, %v645_v8  ;;  %v660_v19 = vadd.f32 %v3197_v14, %v552_v62  ;;  %v924_v21 = vadd.f32 %v3854_v7, %v903_v6  ;;  %v538_v59 = vrot.slane %v3799_v36, 7 }
 0x22a   :  { %v654_v24 = vpop.f32.mrf.mxu1  ;;  %v895_v62 = vsel %vm885_vm3, %v871_v52, 0.0  ;;  %v537_v36 = vrot.slane %v3801_v37, 7  ;;  %v869_v8 = vsel %vm865_vm2, %v860_v40, %v861_v32  ;;  %v862_v14 = vrot.slane %v3829_v56, 1 }
 0x22b   :  { %v923_v28 = vadd.f32 %v3854_v7, %v902_v18  ;;  %v905_v29 = vadd.f32 %v891_v23, %v660_v19  ;;  %v655_v31 = vadd.f32 %v654_v24, %v566_v15  ;;  %v546_v37 = vsel %vm541_vm1, %v535_v44, %v536_v22 }
 0x22c   :  { %v3200_v47 = vpop.f32.mrf.mxu1  ;;  %v572_v18 = vsel %vm558_vm4, %v547_v3, 0.0  ;;  %v539_v23 = vrot.slane %v3817_v49, 7  ;;  %v544_v49 = vsel %vm541_vm1, %v537_v36, %v538_v59  ;;  %v879_v40 = vsel %vm865_vm2, %v864_v10, %v851_v41 }
 0x22d   :  { %3405 = vtanh.f32 %v923_v28  ;;  %v904_v48 = vadd.f32 %v876_v4, %v655_v31  ;;  %v670_v51 = vadd.f32 %v3200_v47, %v550_v20  ;;  %v926_v35 = vadd.f32 %v3854_v7, %v905_v29 }
 0x22e   :  { %3407 = vtanh.f32 %v924_v21  ;;  %v664_v53 = vpop.f32.mrf.mxu1  ;;  %v897_v21 = vsel %vm885_vm3, %v869_v8, 0.0  ;;  %v867_v31 = vsel %vm865_vm2, %v862_v14, %v863_v9  ;;  %v868_v16 = vsel %vm865_vm2, %v861_v32, %v862_v14 }
 0x22f   :  { %v925_v54 = vadd.f32 %v3854_v7, %v904_v48  ;;  %v907_v55 = vadd.f32 %v893_v33, %v670_v51  ;;  %v665_v57 = vadd.f32 %v664_v53, %v568_v25  ;;  %v545_v25 = vsel %vm541_vm1, %v536_v22, %v537_v36 }
 0x230   :  { %v3203_v61 = vpop.f32.mrf.mxu1  ;;  %v574_v47 = vsel %vm558_vm4, %v545_v25, 0.0  ;;  %v899_v42 = vsel %vm885_vm3, %v867_v31, 0.0  ;;  %v543_v53 = vsel %vm541_vm1, %v538_v59, %v539_v23  ;;  %v542_v41 = vsel %vm541_vm1, %v539_v23, %v540_v46 }
 0x231   :  { %3409 = vtanh.f32 %v925_v54  ;;  %v906_v1 = vadd.f32 %v874_v27, %v665_v57  ;;  %v680_v2 = vadd.f32 %v3203_v61, %v548_v58  ;;  %v928_v4 = vadd.f32 %v3854_v7, %v907_v55 }
 0x232   :  { %3411 = vtanh.f32 %v926_v35  ;;  %v674_v6 = vpop.f32.mrf.mxu1  ;;  %v901_v32 = vsel %vm885_vm3, %v879_v40, 0.0  ;;  %v576_v43 = vsel %vm558_vm4, %v543_v53, 0.0  ;;  %vm2263_vm1 = vcmp.eq.s32.totalorder %v3788_v30, 2 }
 0x233   :  { %v927_v5 = vadd.f32 %v3854_v7, %v906_v1  ;;  %v909_v11 = vadd.f32 %v895_v62, %v680_v2  ;;  %v675_v12 = vadd.f32 %v674_v6, %v570_v63  ;;  %v866_v63 = vsel %vm865_vm2, %v863_v9, %v864_v10 }
 0x234   :  { %v3206_v15 = vpop.f32.mrf.mxu1  ;;  %vm2550_vm2 = vcmp.eq.s32.totalorder %v3788_v30, 3  ;;  %vm2699_vm3 = vcmask 257024   ;;  %vm2852_vm4 = vcmask 1024  }
 0x235   :  { %3413 = vtanh.f32 %v927_v5  ;;  %v908_v19 = vadd.f32 %v872_v0, %v675_v12  ;;  %v690_v20 = vadd.f32 %v3206_v15, %v546_v37  ;;  %v930_v56 = vadd.f32 %v3854_v7, %v909_v11  ;;  %v4029_v11 = vld [vmem:[%s4492_s7] ss:$0 sm:$0xff] }
 0x236   :  { %3415 = vtanh.f32 %v928_v4  ;;  %v684_v24 = vpop.f32.mrf.mxu1 }
 0x237   :  { %v929_v27 = vadd.f32 %v3854_v7, %v908_v19  ;;  %v911_v28 = vadd.f32 %v897_v21, %v690_v20  ;;  %v685_v29 = vadd.f32 %v684_v24, %v572_v18 }
 0x238   :  { %v3209_v44 = vpop.f32.mrf.mxu1 }
 0x239   :  { %3417 = vtanh.f32 %v929_v27  ;;  %v910_v45 = vadd.f32 %v870_v34, %v685_v29  ;;  %v700_v22 = vadd.f32 %v3209_v44, %v544_v49  ;;  %v932_v48 = vadd.f32 %v3854_v7, %v911_v28 }
 0x23a   :  { %v3938_v50 = vpop.eup %3405  ;;  %3419 = vtanh.f32 %v930_v56  ;;  %v694_v17 = vpop.f32.mrf.mxu1 }
 0x23b   :  { %v3947_v51 = vpop.eup %3407  ;;  %v931_v52 = vadd.f32 %v3854_v7, %v910_v45  ;;  %v913_v35 = vadd.f32 %v899_v42, %v700_v22  ;;  %v695_v33 = vadd.f32 %v694_v17, %v574_v47  ;;  %3246 = vmatprep.mubr.msk.f32.mxu1 %vm962_vm5, %v3938_v50 }
 0x23c   :  { %v3212_v54 = vpop.f32.mrf.mxu1  ;;  %3247 = vmatmul.mubr.msk.f32.vlgmr.msra.gmra.mxu1 %vm962_vm5, %v3947_v51 }
 0x23d   :  { %3421 = vtanh.f32 %v931_v52  ;;  %v912_v55 = vadd.f32 %v868_v16, %v695_v33  ;;  %v710_v57 = vadd.f32 %v3212_v54, %v542_v41  ;;  %v934_v13 = vadd.f32 %v3854_v7, %v913_v35 }
 0x23e   :  { %v3964_v58 = vpop.eup %3409  ;;  %3423 = vtanh.f32 %v932_v48  ;;  %v704_v59 = vpop.f32.mrf.mxu1 }
 0x23f   :  { %v3971_v46 = vpop.eup %3411  ;;  %v933_v60 = vadd.f32 %v3854_v7, %v912_v55  ;;  %v915_v61 = vadd.f32 %v901_v32, %v710_v57  ;;  %v705_v62 = vadd.f32 %v704_v59, %v576_v43  ;;  %3249 = vmatprep.mubr.msk.f32.mxu1 %vm962_vm5, %v3964_v58 }
 0x240   :  { %3250 = vmatmul.mubr.msk.f32.gmra.mxu1 %vm962_vm5, %v3971_v46 }
 0x241   :  { %3425 = vtanh.f32 %v933_v60  ;;  %v914_v38 = vadd.f32 %v866_v63, %v705_v62  ;;  %v936_v0 = vadd.f32 %v3854_v7, %v915_v61 }
 0x242   :  { %v3980_v39 = vpop.eup %3413  ;;  %3427 = vtanh.f32 %v934_v13 }
 0x243   :  { %v3983_v1 = vpop.eup %3415  ;;  %v935_v2 = vadd.f32 %v3854_v7, %v914_v38  ;;  %3252 = vmatprep.mubr.msk.f32.mxu1 %vm962_vm5, %v3980_v39 }
 0x244   :  { %3253 = vmatmul.mubr.msk.f32.gmra.mxu1 %vm962_vm5, %v3983_v1 }
 0x245   :  { %3429 = vtanh.f32 %v935_v2 }
 0x246   :  { %v3990_v3 = vpop.eup %3417  ;;  %3431 = vtanh.f32 %v936_v0 }
 0x247   :  { %v3992_v36 = vpop.eup %3419  ;;  %3255 = vmatprep.mubr.msk.f32.mxu1 %vm962_vm5, %v3990_v3 }
 0x248   :  { %3256 = vmatmul.mubr.msk.f32.gmra.mxu1 %vm962_vm5, %v3992_v36 }
 0x24a   :  { %v3998_v4 = vpop.eup %3421 }
 0x24b   :  { %v4000_v7 = vpop.eup %3423  ;;  %3258 = vmatprep.mubr.msk.f32.mxu1 %vm962_vm5, %v3998_v4 }
 0x24c   :  { %3259 = vmatmul.mubr.msk.f32.gmra.mxu1 %vm962_vm5, %v4000_v7 }
 0x24e   :  { %v4006_v6 = vpop.eup %3425 }
 0x24f   :  { %v4008_v8 = vpop.eup %3427  ;;  %3261 = vmatprep.mubr.msk.f32.mxu1 %vm962_vm5, %v4006_v6 }
 0x250   :  { %3262 = vmatmul.mubr.msk.f32.gmra.mxu1 %vm962_vm5, %v4008_v8 }
 0x252   :  { %v4014_v9 = vpop.eup %3429 }
 0x253   :  { %v4016_v5 = vpop.eup %3431  ;;  %3264 = vmatprep.mubr.msk.f32.mxu1 %vm962_vm5, %v4014_v9 }
 0x254   :  { %3265 = vmatmul.mubr.msk.f32.gmra.mxu1 %vm962_vm5, %v4016_v5 }
 0x255   :  { %3296 = vmatprep.mubr.msk.f32.mxu1 %vm3521_vm6, %v3520_v26 }
 0x2fc   :  { %v3248_v12 = vpop.f32.mrf.mxu1 }
 0x2fd   :  { %v1077_v14 = vadd.f32 %v3248_v12, %v4029_v11 }
 0x2fe   :  { %v1071_v10 = vpop.f32.mrf.mxu1 }
 0x2ff   :  { %v1072_v37 = vadd.f32 %v4029_v11, %v1071_v10  ;;  %v1141_v18 = vsel %vm962_vm5, %v1077_v14, -inf }
 0x300   :  { %v3251_v15 = vpop.f32.mrf.mxu1 }
 0x301   :  { %v1140_v19 = vsel %vm962_vm5, %v1072_v37, -inf  ;;  %v4036_v20 = vadd.f32 %v3251_v15, %v4029_v11 }
 0x302   :  { %v1142_v21 = vmax.f32 %v1140_v19, %v1141_v18  ;;  %v1081_v23 = vpop.f32.mrf.mxu1 }
 0x303   :  { %v1082_v56 = vadd.f32 %v4029_v11, %v1081_v23  ;;  %v1150_v27 = vsel %vm962_vm5, %v4036_v20, -inf }
 0x304   :  { %v1143_v24 = vrot.slane %v1142_v21, 4  ;;  %v3254_v25 = vpop.f32.mrf.mxu1 }
 0x305   :  { %v1149_v28 = vsel %vm962_vm5, %v1082_v56, -inf  ;;  %v4043_v29 = vadd.f32 %v3254_v25, %v4029_v11 }
 0x306   :  { %v1144_v31 = vmax.f32 %v1142_v21, %v1143_v24  ;;  %v1151_v34 = vmax.f32 %v1149_v28, %v1150_v27  ;;  %v1091_v49 = vpop.f32.mrf.mxu1 }
 0x307   :  { %v4046_v44 = vadd.f32 %v4029_v11, %v1091_v49  ;;  %v1159_v48 = vsel %vm962_vm5, %v4043_v29, -inf }
 0x308   :  { %v1145_v45 = vrot.slane %v1144_v31, 2  ;;  %v1152_v22 = vrot.slane %v1151_v34, 4  ;;  %v3257_v47 = vpop.f32.mrf.mxu1 }
 0x309   :  { %v1158_v42 = vsel %vm962_vm5, %v4046_v44, -inf  ;;  %v4053_v17 = vadd.f32 %v3257_v47, %v4029_v11 }
 0x30a   :  { %v1146_v40 = vmax.f32 %v1144_v31, %v1145_v45  ;;  %v1153_v52 = vmax.f32 %v1151_v34, %v1152_v22  ;;  %v1160_v35 = vmax.f32 %v1158_v42, %v1159_v48  ;;  %v1101_v33 = vpop.f32.mrf.mxu1 }
 0x30b   :  { %v4056_v53 = vadd.f32 %v4029_v11, %v1101_v33  ;;  %v1168_v57 = vsel %vm962_vm5, %v4053_v17, -inf }
 0x30c   :  { %v1147_v16 = vrot.slane %v1146_v40, 1  ;;  %v1154_v41 = vrot.slane %v1153_v52, 2  ;;  %v1161_v54 = vrot.slane %v1160_v35, 4  ;;  %v3260_v55 = vpop.f32.mrf.mxu1 }
 0x30d   :  { %v1167_v13 = vsel %vm962_vm5, %v4056_v53, -inf  ;;  %v4063_v32 = vadd.f32 %v3260_v55, %v4029_v11 }
 0x30e   :  { %v1148_v43 = vmax.f32 %v1146_v40, %v1147_v16  ;;  %v1155_v59 = vmax.f32 %v1153_v52, %v1154_v41  ;;  %v1162_v60 = vmax.f32 %v1160_v35, %v1161_v54  ;;  %v1169_v61 = vmax.f32 %v1167_v13, %v1168_v57  ;;  %v1111_v62 = vpop.f32.mrf.mxu1 }
 0x30f   :  { %v4066_v63 = vadd.f32 %v4029_v11, %v1111_v62  ;;  %v1177_v18 = vsel %vm962_vm5, %v4063_v32, -inf }
 0x310   :  { %v1203_v38 = vsub.f32 %v1072_v37, %v1148_v43  ;;  %v1204_v0 = vsub.f32 %v1077_v14, %v1148_v43  ;;  %v1156_v2 = vrot.slane %v1155_v59, 1  ;;  %v1163_v12 = vrot.slane %v1162_v60, 2  ;;  %v3263_v10 = vpop.f32.mrf.mxu1 }
 0x311   :  { %v1170_v15 = vrot.slane %v1169_v61, 4  ;;  %v1176_v19 = vsel %vm962_vm5, %v4066_v63, -inf  ;;  %v4073_v21 = vadd.f32 %v3263_v10, %v4029_v11 }
 0x312   :  { %v1217_v23 = vmul.f32 1.442695, %v1203_v38  ;;  %v1219_v24 = vmul.f32 1.442695, %v1204_v0  ;;  %v1157_v25 = vmax.f32 %v1155_v59, %v1156_v2  ;;  %v1164_v27 = vmax.f32 %v1162_v60, %v1163_v12  ;;  %v1121_v28 = vpop.f32.mrf.mxu1 }
 0x313   :  { %v1171_v37 = vmax.f32 %v1169_v61, %v1170_v15  ;;  %v1178_v14 = vmax.f32 %v1176_v19, %v1177_v18  ;;  %v1186_v31 = vsel %vm962_vm5, %v4073_v21, -inf  ;;  %v4078_v34 = vadd.f32 %v4029_v11, %v1121_v28 }
 0x314   :  { %3433 = vpow2.f32 %v1217_v23  ;;  %v1205_v49 = vsub.f32 %v1082_v56, %v1157_v25  ;;  %v1206_v45 = vsub.f32 %v4036_v20, %v1157_v25  ;;  %v1165_v22 = vrot.slane %v1164_v27, 1  ;;  %v3266_v47 = vpop.f32.mrf.mxu1 }
 0x315   :  { %3435 = vpow2.f32 %v1219_v24  ;;  %v1172_v48 = vrot.slane %v1171_v37, 2  ;;  %v1179_v42 = vrot.slane %v1178_v14, 4  ;;  %v1185_v40 = vsel %vm962_vm5, %v4078_v34, -inf }
 0x316   :  { %v1221_v52 = vmul.f32 1.442695, %v1205_v49  ;;  %v1223_v35 = vmul.f32 1.442695, %v1206_v45  ;;  %v1166_v33 = vmax.f32 %v1164_v27, %v1165_v22  ;;  %v1187_v16 = vmax.f32 %v1185_v40, %v1186_v31  ;;  %v1131_v41 = vpop.f32.mrf.mxu1 }
 0x317   :  { %v1173_v54 = vmax.f32 %v1171_v37, %v1172_v48  ;;  %v1180_v55 = vmax.f32 %v1178_v14, %v1179_v42  ;;  %v4084_v57 = vadd.f32 %v3266_v47, %v4029_v11  ;;  %v4087_v20 = vadd.f32 %v4029_v11, %v1131_v41 }
 0x318   :  { %3437 = vpow2.f32 %v1221_v52  ;;  %v1207_v56 = vsub.f32 %v4046_v44, %v1166_v33  ;;  %v1208_v13 = vsub.f32 %v4043_v29, %v1166_v33  ;;  %v1188_v43 = vrot.slane %v1187_v16, 4 }
 0x319   :  { %3439 = vpow2.f32 %v1223_v35  ;;  %v1174_v59 = vrot.slane %v1173_v54, 1  ;;  %v1181_v60 = vrot.slane %v1180_v55, 2  ;;  %v1195_v61 = vsel %vm962_vm5, %v4084_v57, -inf }
 0x31a   :  { %v1225_v62 = vmul.f32 1.442695, %v1207_v56  ;;  %v1227_v38 = vmul.f32 1.442695, %v1208_v13  ;;  %v1189_v0 = vmax.f32 %v1187_v16, %v1188_v43  ;;  %v1194_v2 = vsel %vm962_vm5, %v4087_v20, -inf }
 0x31b   :  { %v1175_v11 = vmax.f32 %v1173_v54, %v1174_v59  ;;  %v1182_v12 = vmax.f32 %v1180_v55, %v1181_v60  ;;  %v1196_v10 = vmax.f32 %v1194_v2, %v1195_v61 }
 0x31c   :  { %3441 = vpow2.f32 %v1225_v62  ;;  %v1190_v44 = vrot.slane %v1189_v0, 2 }
 0x31d   :  { %3443 = vpow2.f32 %v1227_v38  ;;  %v1209_v29 = vsub.f32 %v4056_v53, %v1175_v11  ;;  %v1210_v15 = vsub.f32 %v4053_v17, %v1175_v11  ;;  %v1183_v18 = vrot.slane %v1182_v12, 1 }
 0x31e   :  { %v1191_v19 = vmax.f32 %v1189_v0, %v1190_v44  ;;  %v1197_v23 = vrot.slane %v1196_v10, 4 }
 0x31f   :  { %v1229_v24 = vmul.f32 1.442695, %v1209_v29  ;;  %v1231_v25 = vmul.f32 1.442695, %v1210_v15  ;;  %v1184_v27 = vmax.f32 %v1182_v12, %v1183_v18 }
 0x320   :  { %v1192_v28 = vrot.slane %v1191_v19, 1  ;;  %v1198_v37 = vmax.f32 %v1196_v10, %v1197_v23 }
 0x321   :  { %v4097_v14 = vpop.eup %3433  ;;  %3445 = vpow2.f32 %v1229_v24  ;;  %v1211_v31 = vsub.f32 %v4066_v63, %v1184_v27  ;;  %v1212_v49 = vsub.f32 %v4063_v32, %v1184_v27 }
 0x322   :  { %v4101_v45 = vpop.eup %3435  ;;  %v1245_v17 = vsel %vm962_vm5, %v4097_v14, 0.0  ;;  %3447 = vpow2.f32 %v1231_v25  ;;  %v1193_v53 = vmax.f32 %v1191_v19, %v1192_v28  ;;  %v1199_v22 = vrot.slane %v1198_v37, 2 }
 0x323   :  { %v1246_v47 = vsel %vm962_vm5, %v4101_v45, 0.0  ;;  %v1233_v48 = vmul.f32 1.442695, %v1211_v31  ;;  %v1235_v42 = vmul.f32 1.442695, %v1212_v49 }
 0x324   :  { %v1247_v40 = vadd.f32 %v1246_v47, %v1245_v17  ;;  %v1213_v52 = vsub.f32 %v4078_v34, %v1193_v53  ;;  %v1214_v63 = vsub.f32 %v4073_v21, %v1193_v53  ;;  %v1200_v35 = vmax.f32 %v1198_v37, %v1199_v22 }
 0x325   :  { %v4109_v32 = vpop.eup %3437  ;;  %3449 = vpow2.f32 %v1233_v48 }
 0x326   :  { %v4111_v33 = vpop.eup %3439  ;;  %v1248_v16 = vrot.slane %v1247_v40, 4  ;;  %v1254_v41 = vsel %vm962_vm5, %v4109_v32, 0.0  ;;  %3451 = vpow2.f32 %v1235_v42  ;;  %v1237_v54 = vmul.f32 1.442695, %v1213_v52 }
 0x327   :  { %v1255_v55 = vsel %vm962_vm5, %v4111_v33, 0.0  ;;  %v1239_v56 = vmul.f32 1.442695, %v1214_v63  ;;  %v1201_v13 = vrot.slane %v1200_v35, 1 }
 0x328   :  { %v1249_v34 = vadd.f32 %v1248_v16, %v1247_v40  ;;  %v1256_v43 = vadd.f32 %v1255_v55, %v1254_v41  ;;  %3453 = vpow2.f32 %v1237_v54 }
 0x329   :  { %v4117_v21 = vpop.eup %3441  ;;  %3455 = vpow2.f32 %v1239_v56  ;;  %v1202_v59 = vmax.f32 %v1200_v35, %v1201_v13 }
 0x32a   :  { %v4119_v60 = vpop.eup %3443  ;;  %v1250_v61 = vrot.slane %v1249_v34, 2  ;;  %v1257_v62 = vrot.slane %v1256_v43, 4  ;;  %v1263_v38 = vsel %vm962_vm5, %v4117_v21, 0.0 }
 0x32b   :  { %v1264_v0 = vsel %vm962_vm5, %v4119_v60, 0.0  ;;  %v1215_v2 = vsub.f32 %v4087_v20, %v1202_v59  ;;  %v1216_v11 = vsub.f32 %v4084_v57, %v1202_v59 }
 0x32c   :  { %v1251_v12 = vadd.f32 %v1250_v61, %v1249_v34  ;;  %v1258_v10 = vadd.f32 %v1257_v62, %v1256_v43  ;;  %v1265_v44 = vadd.f32 %v1264_v0, %v1263_v38 }
 0x32d   :  { %v1241_v29 = vmul.f32 1.442695, %v1215_v2  ;;  %v1243_v15 = vmul.f32 1.442695, %v1216_v11 }
 0x32e   :  { %v4127_v18 = vpop.eup %3445  ;;  %v1259_v19 = vrot.slane %v1258_v10, 2  ;;  %v1266_v23 = vrot.slane %v1265_v44, 4  ;;  %v1252_v25 = vrot.slane %v1251_v12, 1 }
 0x32f   :  { %v4129_v24 = vpop.eup %3447  ;;  %v1272_v27 = vsel %vm962_vm5, %v4127_v18, 0.0  ;;  %3457 = vpow2.f32 %v1241_v29 }
 0x330   :  { %v1260_v28 = vadd.f32 %v1259_v19, %v1258_v10  ;;  %v1267_v20 = vadd.f32 %v1266_v23, %v1265_v44  ;;  %v1273_v57 = vsel %vm962_vm5, %v4129_v24, 0.0  ;;  %3459 = vpow2.f32 %v1243_v15 }
 0x331   :  { %v1274_v37 = vadd.f32 %v1273_v57, %v1272_v27  ;;  %v1253_v22 = vadd.f32 %v1252_v25, %v1251_v12 }
 0x332   :  { %v4135_v31 = vpop.eup %3449  ;;  %v1261_v49 = vrot.slane %v1260_v28, 1  ;;  %v1268_v17 = vrot.slane %v1267_v20, 2 }
 0x333   :  { %v4137_v53 = vpop.eup %3451  ;;  %v1275_v47 = vrot.slane %v1274_v37, 4  ;;  %v1281_v48 = vsel %vm962_vm5, %v4135_v31, 0.0 }
 0x334   :  { %v1262_v42 = vadd.f32 %v1261_v49, %v1260_v28  ;;  %v1269_v40 = vadd.f32 %v1268_v17, %v1267_v20  ;;  %v1282_v52 = vsel %vm962_vm5, %v4137_v53, 0.0 }
 0x335   :  { %v4143_v63 = vpop.eup %3453  ;;  %v1276_v35 = vadd.f32 %v1275_v47, %v1274_v37  ;;  %v1283_v16 = vadd.f32 %v1282_v52, %v1281_v48 }
 0x336   :  { %v4145_v41 = vpop.eup %3455  ;;  %3461 = vrcp.f32 %v1262_v42  ;;  %v1270_v54 = vrot.slane %v1269_v40, 1  ;;  %v1290_v55 = vsel %vm962_vm5, %v4143_v63, 0.0 }
 0x337   :  { %3463 = vrcp.f32 %v1253_v22  ;;  %v1277_v56 = vrot.slane %v1276_v35, 2  ;;  %v1284_v13 = vrot.slane %v1283_v16, 4  ;;  %v1291_v34 = vsel %vm962_vm5, %v4145_v41, 0.0 }
 0x338   :  { %v1271_v43 = vadd.f32 %v1270_v54, %v1269_v40  ;;  %v1292_v59 = vadd.f32 %v1291_v34, %v1290_v55 }
 0x339   :  { %v1278_v61 = vadd.f32 %v1277_v56, %v1276_v35  ;;  %v1285_v62 = vadd.f32 %v1284_v13, %v1283_v16 }
 0x33a   :  { %3465 = vrcp.f32 %v1271_v43  ;;  %v1293_v38 = vrot.slane %v1292_v59, 4 }
 0x33b   :  { %v1279_v0 = vrot.slane %v1278_v61, 1  ;;  %v1286_v2 = vrot.slane %v1285_v62, 2 }
 0x33c   :  { %v4151_v11 = vpop.eup %3457  ;;  %v1294_v12 = vadd.f32 %v1293_v38, %v1292_v59 }
 0x33d   :  { %v1280_v10 = vadd.f32 %v1279_v0, %v1278_v61  ;;  %v1287_v44 = vadd.f32 %v1286_v2, %v1285_v62  ;;  %v1299_v29 = vsel %vm962_vm5, %v4151_v11, 0.0  ;;  %v4155_v15 = vpop.eup %3459 }
 0x33e   :  { %v1295_v19 = vrot.slane %v1294_v12, 2  ;;  %v1300_v25 = vsel %vm962_vm5, %v4155_v15, 0.0 }
 0x33f   :  { %3467 = vrcp.f32 %v1280_v10  ;;  %v1288_v23 = vrot.slane %v1287_v44, 1  ;;  %v1301_v28 = vadd.f32 %v1300_v25, %v1299_v29 }
 0x340   :  { %v1296_v27 = vadd.f32 %v1295_v19, %v1294_v12 }
 0x341   :  { %v1289_v20 = vadd.f32 %v1288_v23, %v1287_v44  ;;  %v1302_v37 = vrot.slane %v1301_v28, 4 }
 0x342   :  { %v1297_v57 = vrot.slane %v1296_v27, 1 }
 0x343   :  { %v3462_v49 = vpop.eup %3461  ;;  %3469 = vrcp.f32 %v1289_v20  ;;  %v1303_v42 = vadd.f32 %v1302_v37, %v1301_v28 }
 0x344   :  { %v3464_v17 = vpop.eup %3463  ;;  %v1312_v22 = vmul.f32 %v3462_v49, %v4109_v32  ;;  %v1313_v47 = vmul.f32 %v3462_v49, %v4111_v33  ;;  %v1298_v48 = vadd.f32 %v1297_v57, %v1296_v27 }
 0x345   :  { %v1309_v52 = vmul.f32 %v3464_v17, %v4097_v14  ;;  %v1310_v35 = vmul.f32 %v3464_v17, %v4101_v45  ;;  %v1304_v16 = vrot.slane %v1303_v42, 2 }
 0x346   :  { %3471 = vrcp.f32 %v1298_v48  ;;  %v1331_v54 = vmul.f32 %v3964_v58, %v1312_v22  ;;  %v1332_v55 = vmul.f32 %v3971_v46, %v1313_v47 }
 0x347   :  { %v3466_v40 = vpop.eup %3465  ;;  %v1305_v32 = vadd.f32 %v1304_v16, %v1303_v42  ;;  %v1329_v43 = vmul.f32 %v3938_v50, %v1309_v52  ;;  %v1330_v14 = vmul.f32 %v3947_v51, %v1310_v35 }
 0x348   :  { %v1315_v56 = vmul.f32 %v3466_v40, %v4117_v21  ;;  %v1316_v13 = vmul.f32 %v3466_v40, %v4119_v60  ;;  %v1352_v61 = vsel %vm962_vm5, %v1331_v54, 0.0  ;;  %v1353_v58 = vsel %vm962_vm5, %v1332_v55, 0.0 }
 0x349   :  { %v1306_v45 = vrot.slane %v1305_v32, 1  ;;  %v1344_v50 = vsel %vm962_vm5, %v1330_v14, 0.0  ;;  %v1354_v2 = vadd.f32 %v1353_v58, %v1352_v61 }
 0x34a   :  { %v1333_v33 = vmul.f32 %v3980_v39, %v1315_v56  ;;  %v1334_v34 = vmul.f32 %v3983_v1, %v1316_v13  ;;  %v1343_v1 = vsel %vm962_vm5, %v1329_v43, 0.0 }
 0x34b   :  { %v1307_v62 = vadd.f32 %v1306_v45, %v1305_v32  ;;  %v1345_v29 = vadd.f32 %v1344_v50, %v1343_v1 }
 0x34c   :  { %v3468_v59 = vpop.eup %3467  ;;  %v1361_v46 = vsel %vm962_vm5, %v1333_v33, 0.0  ;;  %v1362_v21 = vsel %vm962_vm5, %v1334_v34, 0.0 }
 0x34d   :  { %v1318_v60 = vmul.f32 %v3468_v59, %v4127_v18  ;;  %v1319_v39 = vmul.f32 %v3468_v59, %v4129_v24  ;;  %v1363_v12 = vadd.f32 %v1362_v21, %v1361_v46  ;;  %3473 = vrcp.f32 %v1307_v62 }
 0x34f   :  { %v1335_v51 = vmul.f32 %v3990_v3, %v1318_v60  ;;  %v1336_v38 = vmul.f32 %v3992_v36, %v1319_v39  ;;  %v1355_v36 = vrot.slane %v1354_v2, 4  ;;  %v1364_v27 = vrot.slane %v1363_v12, 4 }
 0x350   :  { %v3470_v0 = vpop.eup %3469 }
 0x351   :  { %v1370_v10 = vsel %vm962_vm5, %v1335_v51, 0.0  ;;  %v1371_v44 = vsel %vm962_vm5, %v1336_v38, 0.0  ;;  %v1321_v18 = vmul.f32 %v3470_v0, %v4135_v31  ;;  %v1322_v24 = vmul.f32 %v3470_v0, %v4137_v53 }
 0x352   :  { %v1372_v19 = vadd.f32 %v1371_v44, %v1370_v10  ;;  %v1346_v31 = vrot.slane %v1345_v29, 4  ;;  %v1356_v22 = vadd.f32 %v1355_v36, %v1354_v2  ;;  %v1365_v47 = vadd.f32 %v1364_v27, %v1363_v12 }
 0x353   :  { %v1337_v23 = vmul.f32 %v3998_v4, %v1321_v18  ;;  %v1338_v3 = vmul.f32 %v4000_v7, %v1322_v24  ;;  %v3472_v25 = vpop.eup %3471 }
 0x354   :  { %v1324_v20 = vmul.f32 %v3472_v25, %v4143_v63  ;;  %v1325_v57 = vmul.f32 %v3472_v25, %v4145_v41  ;;  %v1373_v49 = vrot.slane %v1372_v19, 4  ;;  %v1347_v40 = vadd.f32 %v1346_v31, %v1345_v29  ;;  %v4221_v31 = vld [vmem:[%s4494_s9 + $0x10] sm:$0xff] }
 0x355   :  { %v1379_v28 = vsel %vm962_vm5, %v1337_v23, 0.0  ;;  %v1380_v37 = vsel %vm962_vm5, %v1338_v3, 0.0  ;;  %v1357_v35 = vrot.slane %v1356_v22, 2  ;;  %v1366_v55 = vrot.slane %v1365_v47, 2 }
 0x356   :  { %v1381_v53 = vadd.f32 %v1380_v37, %v1379_v28  ;;  %v1339_v17 = vmul.f32 %v4006_v6, %v1324_v20  ;;  %v1340_v4 = vmul.f32 %v4008_v8, %v1325_v57  ;;  %v1374_v63 = vadd.f32 %v1373_v49, %v1372_v19  ;;  %v1406_v20 = vld [vmem:[%s4493_s2] sm:$0x3]  ;;  %v4210_v37 = vld [vmem:[%s4494_s9 + $0x18] sm:$0xff]  ;;  %v4230_v49 = vld [vmem:[%s4494_s9 + $0x8] sm:$0xff] }
 0x357   :  { %v1348_v8 = vrot.slane %v1347_v40, 2  ;;  %v1358_v14 = vadd.f32 %v1357_v35, %v1356_v22  ;;  %v1367_v45 = vadd.f32 %v1366_v55, %v1365_v47  ;;  %v4262_v22 = vld [vmem:[%s4495_s8 + $0x8] sm:$0xff] }
 0x358   :  { %v1382_v7 = vrot.slane %v1381_v53, 4  ;;  %v1388_v48 = vsel %vm962_vm5, %v1339_v17, 0.0  ;;  %v1389_v42 = vsel %vm962_vm5, %v1340_v4, 0.0  ;;  %v1375_v13 = vrot.slane %v1374_v63, 2  ;;  %v4245_v17 = vld [vmem:[%s4495_s8 + $0x18] sm:$0xff]  ;;  %v4253_v4 = vld [vmem:[%s4495_s8 + $0x10] sm:$0xff] }
 0x359   :  { %v1390_v52 = vadd.f32 %v1389_v42, %v1388_v48  ;;  %v1349_v61 = vadd.f32 %v1348_v8, %v1347_v40  ;;  %v1368_v62 = vrot.slane %v1367_v45, 1 }
 0x35a   :  { %v1383_v41 = vadd.f32 %v1382_v7, %v1381_v53  ;;  %v3474_v54 = vpop.eup %3473  ;;  %v1376_v58 = vadd.f32 %v1375_v13, %v1374_v63  ;;  %v4238_v53 = vld [vmem:[%s4494_s9] sm:$0xff] }
 0x35b   :  { %v1391_v16 = vrot.slane %v1390_v52, 4  ;;  %v1327_v56 = vmul.f32 %v3474_v54, %v4151_v11  ;;  %v1328_v6 = vmul.f32 %v3474_v54, %v4155_v15  ;;  %v1359_v15 = vrot.slane %v1358_v14, 1  ;;  %v4271_v7 = vld [vmem:[%s4495_s8] sm:$0xff] }
 0x35c   :  { %v1384_v32 = vrot.slane %v1383_v41, 2  ;;  %v1350_v50 = vrot.slane %v1349_v61, 1  ;;  %v1377_v51 = vrot.slane %v1376_v58, 1  ;;  %v1369_v2 = vadd.f32 %v1368_v62, %v1367_v45 }
 0x35d   :  { %v1392_v33 = vadd.f32 %v1391_v16, %v1390_v52  ;;  %v1341_v34 = vmul.f32 %v4014_v9, %v1327_v56  ;;  %v1342_v43 = vmul.f32 %v4016_v5, %v1328_v6  ;;  %v1360_v5 = vadd.f32 %v1359_v15, %v1358_v14  ;;  %v4289_v52 = vld [vmem:[%s4496_s10] ss:$0 sm:$0xff] }
 0x35e   :  { %v1385_v11 = vadd.f32 %v1384_v32, %v1383_v41  ;;  %v1351_v10 = vadd.f32 %v1350_v50, %v1349_v61  ;;  %v1378_v44 = vadd.f32 %v1377_v51, %v1376_v58 }
 0x35f   :  { %v1393_v59 = vrot.slane %v1392_v33, 2  ;;  %v1397_v46 = vsel %vm962_vm5, %v1341_v34, 0.0  ;;  %v1398_v21 = vsel %vm962_vm5, %v1342_v43, 0.0 }
 0x360   :  { %v1399_v60 = vadd.f32 %v1398_v21, %v1397_v46  ;;  %v1386_v9 = vrot.slane %v1385_v11, 1  ;;  %v1415_v19 = vsel %vm1414_vm7, %v1360_v5, %v1351_v10 }
 0x361   :  { %v1394_v39 = vadd.f32 %v1393_v59, %v1392_v33  ;;  %v1417_v3 = vsel %vm1416_vm8, %v1369_v2, %v1415_v19  ;;  %v2955_v33 = vld [vmem:[%s4493_s2 + $0x2] sm:$0x3] }
 0x362   :  { %v1400_v1 = vrot.slane %v1399_v60, 4  ;;  %v1387_v18 = vadd.f32 %v1386_v9, %v1385_v11  ;;  %v1419_v25 = vsel %vm1418_vm9, %v1378_v44, %v1417_v3 }
 0x363   :  { %v1395_v0 = vrot.slane %v1394_v39, 1 }
 0x364   :  { %v1401_v38 = vadd.f32 %v1400_v1, %v1399_v60  ;;  %v1421_v27 = vsel %vm1420_vm10, %v1387_v18, %v1419_v25 }
 0x365   :  { %v1396_v29 = vadd.f32 %v1395_v0, %v1394_v39 }
 0x366   :  { %v1402_v12 = vrot.slane %v1401_v38, 2 }
 0x367   :  { %v1423_v28 = vsel %vm1422_vm11, %v1396_v29, %v1421_v27  ;;  %v3524_v29 = vmov 1966171168  }
 0x368   :  { %v1403_v24 = vadd.f32 %v1402_v12, %v1401_v38  ;;  %v2962_v12 = vld [vmem:[%s4493_s2 + $0x4] sm:$0x3]  ;;  %v1694_v19 = vunpack.c.l.s4 %v3524_v29 }
 0x36a   :  { %v1404_v23 = vrot.slane %v1403_v24, 1 }
 0x36c   :  { %v1405_v36 = vadd.f32 %v1404_v23, %v1403_v24  ;;  %v1695_v23 = vunpack.c.0.s8 %v1694_v19 }
 0x36e   :  { %v4205_v57 = vsel %vm1424_vm12, %v1405_v36, %v1423_v28  ;;  %v4353_v36 = vsub.s32 %v1695_v23, %v3788_v30 }
 0x36f   :  { %3268 = vmatpush3.msk.msra.mxu0 %vm1430_vm13, %v4205_v57  ;;  %3295 = vmatpush3.msk.msra.mxu1 %vm1430_vm13, %v4205_v57 }
 0x370   :  { %3270 = vmatmul.mubr.msk.f32.vlgmr.msra.gmra.mxu0 %vm1426_vm14, %v1406_v20  ;;  %3272 = vmatprep.subr.mxu0 %v3520_v26 }
 0x371   :  { %3273 = vmatpush3.msra.mxu0 %v4210_v37  ;;  %3280 = vmatprep.mubr.msk.f32.mxu0 %vm3521_vm6, %v3520_v26 }
 0x372   :  { %3274 = vmatprep.subr.mxu0 %v3520_v26  ;;  %3310 = vmatprep.subr.mxu1 %v3520_v26 }
 0x373   :  { %3275 = vmatpush3.msra.mxu0 %v4221_v31  ;;  %3297 = vmatmul.mubr.msk.f32.vlgmr.msra.gmra.mxu1 %vm1426_vm14, %v2955_v33 }
 0x374   :  { %3276 = vmatprep.subr.mxu0 %v3520_v26  ;;  %3311 = vmatpush3.msra.mxu1 %v4245_v17 }
 0x375   :  { %3277 = vmatpush3.msra.mxu0 %v4230_v49  ;;  %3318 = vmatprep.mubr.msk.f32.mxu1 %vm3521_vm6, %v3520_v26 }
 0x376   :  { %3278 = vmatprep.subr.mxu0 %v3520_v26  ;;  %3312 = vmatprep.subr.mxu1 %v3520_v26 }
 0x377   :  { %3279 = vmatpush3.msra.mxu0 %v4238_v53  ;;  %3313 = vmatpush3.msra.mxu1 %v4253_v4 }
 0x378   :  { %3283 = vmatprep.subr.mxu0 %v3520_v26  ;;  %3281 = vmatmul.mubr.f32.vlgmr.msra.gmra.mxu0 %v3520_v26 }
 0x379   :  { %3284 = vmatpush3.msra.mxu0 %v4245_v17  ;;  %3291 = vmatprep.mubr.msk.f32.mxu0 %vm3521_vm6, %v3520_v26 }
 0x37a   :  { %3285 = vmatprep.subr.mxu0 %v3520_v26  ;;  %3314 = vmatprep.subr.mxu1 %v3520_v26 }
 0x37b   :  { %3286 = vmatpush3.msra.mxu0 %v4253_v4  ;;  %3315 = vmatpush3.msra.mxu1 %v4262_v22 }
 0x37c   :  { %3287 = vmatprep.subr.mxu0 %v3520_v26  ;;  %3316 = vmatprep.subr.mxu1 %v3520_v26 }
 0x37d   :  { %3288 = vmatpush3.msra.mxu0 %v4262_v22  ;;  %3317 = vmatpush3.msra.mxu1 %v4271_v7 }
 0x37e   :  { %3289 = vmatprep.subr.mxu0 %v3520_v26  ;;  %3326 = vmatprep.subr.mxu1 %v3520_v26 }
 0x37f   :  { %3290 = vmatpush3.msra.mxu0 %v4271_v7 }
 0x380   :  { %3299 = vmatprep.subr.mxu0 %v3520_v26 }
 0x430   :  { %v1499_v47 = vpop.f32.mrf.mxu0 }
 0x431   :  { %3292 = vmatmul.mubr.msk.f32.vlgmr.msra.gmra.mxu0 %vm962_vm5, %v1499_v47 }
 0x432   :  { %v3271_v48 = vpop.f32.mrf.mxu0  ;;  %3300 = vmatpush3.msra.mxu0 %v4210_v37  ;;  %3307 = vmatprep.mubr.msk.f32.mxu0 %vm3521_vm6, %v3520_v26 }
 0x433   :  { %3301 = vmatprep.subr.mxu0 %v3520_v26  ;;  %v1800_v59 = vpop.f32.mrf.mxu1 }
 0x434   :  { %3302 = vmatpush3.msra.mxu0 %v4221_v31  ;;  %3319 = vmatmul.mubr.msk.f32.vlgmr.msra.gmra.mxu1 %vm962_vm5, %v1800_v59 }
 0x435   :  { %3303 = vmatprep.subr.mxu0 %v3520_v26  ;;  %v3298_v61 = vpop.f32.mrf.mxu1  ;;  %3327 = vmatpush3.msra.mxu1 %v4210_v37 }
 0x436   :  { %3304 = vmatpush3.msra.mxu0 %v4230_v49  ;;  %3334 = vmatprep.mubr.msk.f32.mxu1 %vm3521_vm6, %v3520_v26 }
 0x437   :  { %3305 = vmatprep.subr.mxu0 %v3520_v26  ;;  %3328 = vmatprep.subr.mxu1 %v3520_v26 }
 0x438   :  { %v1580_v42 = vpop.f32.mrf.mxu0  ;;  %3306 = vmatpush3.msra.mxu0 %v4238_v53  ;;  %3329 = vmatpush3.msra.mxu1 %v4221_v31 }
 0x439   :  { %3321 = vmatprep.subr.mxu0 %v3520_v26  ;;  %3330 = vmatprep.subr.mxu1 %v3520_v26 }
 0x43a   :  { %v3282_v40 = vpop.f32.mrf.mxu0  ;;  %3331 = vmatpush3.msra.mxu1 %v4230_v49 }
 0x43b   :  { %3332 = vmatprep.subr.mxu1 %v3520_v26 }
 0x43c   :  { %3333 = vmatpush3.msra.mxu1 %v4238_v53 }
 0x43d   :  { %3348 = vmatprep.subr.mxu1 %v3520_v26 }
 0x4f1   :  { %v1653_v63 = vpop.f32.mrf.mxu0 }
 0x4f2   :  { %v1654_v41 = vadd.f32 %v1653_v63, %v1580_v42  ;;  %v2954_v63 = vsel %vm1689_vm15, 1.0, %v3520_v26 }
 0x4f3   :  { %v3293_v35 = vpop.f32.mrf.mxu0 }
 0x4f4   :  { %v1664_v16 = vadd.f32 %v4289_v52, %v1654_v41  ;;  %v1947_v11 = vpop.f32.mrf.mxu1  ;;  %v2961_v41 = vsel %vm1976_vm0, 1.0, %v3520_v26 }
 0x4f6   :  { %3475 = vtanh.f32 %v1664_v16  ;;  %v2953_v55 = vmul.f32 -1.442695, %v1664_v16  ;;  %v3320_v60 = vpop.f32.mrf.mxu1 }
 0x4f8   :  { %3477 = vpow2.f32 %v2953_v55 }
 0x503   :  { %v3476_v54 = vpop.eup %3475 }
 0x504   :  { %1674 = vrot.lane.b32.xlu0 %v3476_v54, %s3522_s30 }
 0x505   :  { %v3478_v56 = vpop.eup %3477 }
 0x506   :  { %v1668_v6 = vadd.f32 1.0, %v3478_v56 }
 0x508   :  { %3479 = vrcp.f32 %v1668_v6 }
 0x515   :  { %v3480_v8 = vpop.eup %3479 }
 0x516   :  { %v1672_v34 = vmul.f32 0.0, %v3480_v8 }
 0x576   :  { %v1675_v13 = vpop.permute.xlu0 %1674 }
 0x577   :  { %v1677_v32 = vmul.f32 %v3480_v8, %v1675_v13 }
 0x579   :  { %1679 = vrot.lane.b32.xlu1 %v1677_v32, %s3523_s5 }
 0x5eb   :  { %v1680_v43 = vpop.permute.xlu1 %1679 }
 0x5ec   :  { %v1682_v14 = vadd.f32 %v1680_v43, %v1672_v34 }
 0x5ee   :  { %3481 = vtanh.f32 %v1682_v14 }
 0x5fb   :  { %v3482_v45 = vpop.eup %3481 }
 0x5fc   :  { %1685 = vrot.lane.b32.xlu0 %v3482_v45, %s3522_s30 }
 0x66e   :  { %v1686_v58 = vpop.permute.xlu0 %1685 }
 0x66f   :  { %v1688_v46 = vmul.f32 %v3480_v8, %v1686_v58 }
 0x671   :  { %1804 = vrot.lane.b32.xlu1 %v1688_v46, %s3523_s5  ;;  %v1699_v27 = vrot.slane %v1688_v46, %v4353_v36 }
 0x673   :  { %v1700_v28 = vcombine.high %v1699_v27, %v1699_v27  ;;  %v1707_v47 = vrot.slane %v1699_v27, %v4353_v36 }
 0x6e3   :  { %v1805_v21 = vpop.permute.xlu1 %1804 }
 0x6e4   :  { %3308 = vmatmul.mubr.msk.f32.vlgmr.msra.gmra.mxu0 %vm962_vm5, %v1805_v21 }
 0x6e5   :  { %3322 = vmatpush3.msk.msra.mxu0 %vm1430_vm13, %v4205_v57  ;;  %3323 = vmatprep.mubr.msk.f32.mxu0 %vm3521_vm6, %v3520_v26 }
 0x6e6   :  { %3337 = vmatprep.subr.mxu0 %v3520_v26 }
 0x6e8   :  { %3324 = vmatmul.mubr.msk.f32.vlgmr.msra.gmra.mxu0 %vm1426_vm14, %v2962_v12 }
 0x6e9   :  { %3338 = vmatpush3.msra.mxu0 %v4245_v17  ;;  %3345 = vmatprep.mubr.msk.f32.mxu0 %vm3521_vm6, %v3520_v26 }
 0x6ea   :  { %3339 = vmatprep.subr.mxu0 %v3520_v26 }
 0x6eb   :  { %3340 = vmatpush3.msra.mxu0 %v4253_v4 }
 0x6ec   :  { %3341 = vmatprep.subr.mxu0 %v3520_v26 }
 0x6ed   :  { %3342 = vmatpush3.msra.mxu0 %v4262_v22 }
 0x6ee   :  { %3343 = vmatprep.subr.mxu0 %v3520_v26 }
 0x6ef   :  { %3344 = vmatpush3.msra.mxu0 %v4271_v7 }
 0x6f0   :  { %3353 = vmatprep.subr.mxu0 %v3520_v26 }
 0x7a4   :  { %v1874_v15 = vpop.f32.mrf.mxu0 }
 0x7a5   :  { %v1948_v39 = vadd.f32 %v1947_v11, %v1874_v15 }
 0x7a6   :  { %v3309_v62 = vpop.f32.mrf.mxu0 }
 0x7a7   :  { %v1951_v1 = vadd.f32 %v4289_v52, %v1948_v39  ;;  %v2969_v62 = vld [vmem:[%s4493_s2 + $0x6] sm:$0x3] }
 0x7a8   :  { %v2087_v3 = vpop.f32.mrf.mxu0 }
 0x7a9   :  { %3483 = vtanh.f32 %v1951_v1  ;;  %v2960_v51 = vmul.f32 -1.442695, %v1951_v1  ;;  %3346 = vmatmul.mubr.msk.f32.vlgmr.msra.gmra.mxu0 %vm962_vm5, %v2087_v3 }
 0x7aa   :  { %v3325_v25 = vpop.f32.mrf.mxu0  ;;  %3354 = vmatpush3.msra.mxu0 %v4210_v37  ;;  %3361 = vmatprep.mubr.msk.f32.mxu0 %vm3521_vm6, %v3520_v26  ;;  %v4364_v37 = vsub.s32 0, %v3788_v30 }
 0x7ab   :  { %3485 = vpow2.f32 %v2960_v51  ;;  %3355 = vmatprep.subr.mxu0 %v3520_v26 }
 0x7ac   :  { %3356 = vmatpush3.msra.mxu0 %v4221_v31 }
 0x7ad   :  { %3357 = vmatprep.subr.mxu0 %v3520_v26 }
 0x7ae   :  { %3358 = vmatpush3.msra.mxu0 %v4230_v49  ;;  %v1714_v49 = vrot.slane %v1700_v28, %v4353_v36 }
 0x7af   :  { %3359 = vmatprep.subr.mxu0 %v3520_v26 }
 0x7b0   :  { %3360 = vmatpush3.msra.mxu0 %v4238_v53  ;;  %v1718_v53 = vrot.slane %v1707_v47, %v4364_v37  ;;  %v1722_v35 = vrot.slane %v1714_v49, %v4364_v37 }
 0x7b1   :  { %3375 = vmatprep.subr.mxu0 %v3520_v26 }
 0x7b2   :  { %v1725_v55 = vmul.f32 %v2954_v63, %v1718_v53  ;;  %v1726_v8 = vmul.f32 %v2954_v63, %v1722_v35 }
 0x7b6   :  { %v3484_v50 = vpop.eup %3483 }
 0x7b7   :  { %1961 = vrot.lane.b32.xlu0 %v3484_v50, %s3522_s30 }
 0x7b8   :  { %v3486_v9 = vpop.eup %3485 }
 0x7b9   :  { %v1955_v38 = vadd.f32 1.0, %v3486_v9 }
 0x7bb   :  { %3487 = vrcp.f32 %v1955_v38 }
 0x7c8   :  { %v3488_v5 = vpop.eup %3487 }
 0x7c9   :  { %v1959_v10 = vmul.f32 %v3488_v5, %v1682_v14 }
 0x829   :  { %v1962_v0 = vpop.permute.xlu0 %1961 }
 0x82a   :  { %v1964_v2 = vmul.f32 %v3488_v5, %v1962_v0 }
 0x82c   :  { %1966 = vrot.lane.b32.xlu1 %v1964_v2, %s3523_s5  ;;  %v2968_v2 = vsel %vm2263_vm1, 1.0, %v3520_v26 }
 0x869   :  { %v2234_v43 = vpop.f32.mrf.mxu0 }
 0x86b   :  { %v3347_v14 = vpop.f32.mrf.mxu0 }
 0x89e   :  { %v1967_v44 = vpop.permute.xlu1 %1966 }
 0x89f   :  { %v4344_v18 = vadd.f32 %v1967_v44, %v1959_v10 }
 0x8a1   :  { %3489 = vtanh.f32 %v4344_v18 }
 0x8ae   :  { %v3490_v24 = vpop.eup %3489 }
 0x8af   :  { %1972 = vrot.lane.b32.xlu0 %v3490_v24, %s3522_s30 }
 0x921   :  { %v1973_v20 = vpop.permute.xlu0 %1972 }
 0x922   :  { %v1975_v31 = vmul.f32 %v3488_v5, %v1973_v20 }
 0x924   :  { %v1986_v48 = vrot.slane %v1975_v31, %v4353_v36  ;;  %2091 = vrot.lane.b32.xlu1 %v1975_v31, %s3523_s5 }
 0x926   :  { %v1987_v42 = vcombine.high %v1986_v48, %v1986_v48  ;;  %v1994_v40 = vrot.slane %v1986_v48, %v4353_v36 }
 0x928   :  { %v2001_v16 = vrot.slane %v1987_v42, %v4353_v36  ;;  %v2005_v54 = vrot.slane %v1994_v40, %v4364_v37 }
 0x92a   :  { %v2009_v56 = vrot.slane %v2001_v16, %v4364_v37  ;;  %v2012_v6 = vmul.f32 %v2961_v41, %v2005_v54 }
 0x92c   :  { %v2013_v13 = vmul.f32 %v2961_v41, %v2009_v56  ;;  %v2014_v32 = vadd.f32 %v2012_v6, %v1725_v55  ;;  %v2595_v6 = vld [vmem:[%s4498_s11 + $0x18] sm:$0xff] }
 0x92e   :  { %v2015_v33 = vadd.f32 %v2013_v13, %v1726_v8  ;;  %v2594_v8 = vld [vmem:[%s4498_s11 + $0x10] sm:$0xff]  ;;  %v2593_v13 = vld [vmem:[%s4498_s11 + $0x8] sm:$0xff] }
 0x996   :  { %v2092_v34 = vpop.permute.xlu1 %2091 }
 0x997   :  { %3335 = vmatmul.mubr.msk.f32.vlgmr.msra.gmra.mxu1 %vm962_vm5, %v2092_v34 }
 0x998   :  { %3349 = vmatpush3.msk.msra.mxu1 %vm1430_vm13, %v4205_v57  ;;  %3350 = vmatprep.mubr.msk.f32.mxu1 %vm3521_vm6, %v3520_v26 }
 0x999   :  { %3364 = vmatprep.subr.mxu1 %v3520_v26 }
 0x99b   :  { %3351 = vmatmul.mubr.msk.f32.vlgmr.msra.gmra.mxu1 %vm1426_vm14, %v2969_v62 }
 0x99c   :  { %3365 = vmatpush3.msra.mxu1 %v4245_v17  ;;  %3372 = vmatprep.mubr.msk.f32.mxu1 %vm3521_vm6, %v3520_v26 }
 0x99d   :  { %3366 = vmatprep.subr.mxu1 %v3520_v26 }
 0x99e   :  { %3367 = vmatpush3.msra.mxu1 %v4253_v4 }
 0x99f   :  { %3368 = vmatprep.subr.mxu1 %v3520_v26 }
 0x9a0   :  { %3369 = vmatpush3.msra.mxu1 %v4262_v22 }
 0x9a1   :  { %3370 = vmatprep.subr.mxu1 %v3520_v26 }
 0x9a2   :  { %3371 = vmatpush3.msra.mxu1 %v4271_v7 }
 0x9a3   :  { %3386 = vmatprep.subr.mxu1 %v3520_v26 }
 0xa57   :  { %v2161_v45 = vpop.f32.mrf.mxu1 }
 0xa58   :  { %v2235_v59 = vadd.f32 %v2234_v43, %v2161_v45 }
 0xa59   :  { %v3336_v61 = vpop.f32.mrf.mxu1 }
 0xa5a   :  { %v2238_v58 = vadd.f32 %v4289_v52, %v2235_v59  ;;  %v2975_v59 = vsel %vm2550_vm2, 1.0, %v3520_v26 }
 0xa5b   :  { %v2374_v9 = vpop.f32.mrf.mxu1 }
 0xa5c   :  { %3491 = vtanh.f32 %v2238_v58  ;;  %v2967_v21 = vmul.f32 -1.442695, %v2238_v58  ;;  %3373 = vmatmul.mubr.msk.f32.vlgmr.msra.gmra.mxu1 %vm962_vm5, %v2374_v9  ;;  %v2976_v9 = vld [vmem:[%s4501_s12] ss:$0 sm:$0xff] }
 0xa5d   :  { %v3352_v4 = vpop.f32.mrf.mxu1  ;;  %3394 = vmatprep.mubr.msk.f32.mxu1 %vm3521_vm6, %v3520_v26 }
 0xa5e   :  { %3493 = vpow2.f32 %v2967_v21 }
 0xa69   :  { %v3492_v46 = vpop.eup %3491 }
 0xa6a   :  { %2248 = vrot.lane.b32.xlu0 %v3492_v46, %s3522_s30 }
 0xa6b   :  { %v3494_v11 = vpop.eup %3493 }
 0xa6c   :  { %v2242_v57 = vadd.f32 1.0, %v3494_v11  ;;  %v2591_v11 = vld [vmem:[%s4497_s1 + $0x4] sm:$0xf] }
 0xa6e   :  { %3495 = vrcp.f32 %v2242_v57 }
 0xa7b   :  { %v3496_v60 = vpop.eup %3495 }
 0xa7c   :  { %v2246_v1 = vmul.f32 %v3496_v60, %v4344_v18 }
 0xadc   :  { %v2249_v15 = vpop.permute.xlu0 %2248 }
 0xadd   :  { %v2251_v39 = vmul.f32 %v3496_v60, %v2249_v15  ;;  %v2979_v15 = vadd.f32 -1.0, %v2591_v11 }
 0xadf   :  { %2253 = vrot.lane.b32.xlu1 %v2251_v39, %s3523_s5  ;;  %v2686_v62 = vmul.f32 1e+09, %v2979_v15 }
 0xb1c   :  { %v2521_v3 = vpop.f32.mrf.mxu1 }
 0xb1e   :  { %v3374_v25 = vpop.f32.mrf.mxu1 }
 0xb51   :  { %v2254_v17 = vpop.permute.xlu1 %2253 }
 0xb52   :  { %v2256_v50 = vadd.f32 %v2254_v17, %v2246_v1  ;;  %v2762_v1 = vld [vmem:[%s4499_s13 + $0x10] sm:$0xff]  ;;  %v2761_v17 = vld [vmem:[%s4499_s13 + $0x8] sm:$0xff] }
 0xb54   :  { %3497 = vtanh.f32 %v2256_v50 }
 0xb61   :  { %v3498_v51 = vpop.eup %3497 }
 0xb62   :  { %2259 = vrot.lane.b32.xlu0 %v3498_v51, %s3522_s30  ;;  %v20_v51 = vstv %s4500_s14 }
 0xb63   :  { %21 = vst [vmem:[#allocation2] sm:$0x1] %v20_v51 }
 0xbd4   :  { %v2260_v22 = vpop.permute.xlu0 %2259 }
 0xbd5   :  { %v2262_v38 = vmul.f32 %v3496_v60, %v2260_v22 }
 0xbd7   :  { %v2273_v7 = vrot.slane %v2262_v38, %v4353_v36  ;;  %2378 = vrot.lane.b32.xlu1 %v2262_v38, %s3523_s5 }
 0xbd9   :  { %v2274_v5 = vcombine.high %v2273_v7, %v2273_v7  ;;  %v2281_v0 = vrot.slane %v2273_v7, %v4353_v36 }
 0xbdb   :  { %v2288_v12 = vrot.slane %v2274_v5, %v4353_v36  ;;  %v2292_v10 = vrot.slane %v2281_v0, %v4364_v37 }
 0xbdd   :  { %v2296_v44 = vrot.slane %v2288_v12, %v4364_v37  ;;  %v2299_v18 = vmul.f32 %v2968_v2, %v2292_v10 }
 0xbdf   :  { %v2301_v24 = vadd.f32 %v2299_v18, %v2014_v32  ;;  %v2300_v29 = vmul.f32 %v2968_v2, %v2296_v44  ;;  %v2592_v32 = vld [vmem:[%s4498_s11] sm:$0xff] }
 0xbe1   :  { %v2302_v19 = vadd.f32 %v2300_v29, %v2015_v33 }
 0xc49   :  { %v2379_v23 = vpop.permute.xlu1 %2378 }
 0xc4a   :  { %3362 = vmatmul.mubr.msk.f32.vlgmr.msra.gmra.mxu0 %vm962_vm5, %v2379_v23 }
 0xc4b   :  { %3383 = vmatprep.mubr.msk.f32.mxu0 %vm3521_vm6, %v3520_v26  ;;  %3376 = vmatpush3.msra.mxu0 %v2595_v6 }
 0xc4c   :  { %3377 = vmatprep.subr.mxu0 %v3520_v26 }
 0xc4d   :  { %3378 = vmatpush3.msra.mxu0 %v2594_v8 }
 0xc4e   :  { %3379 = vmatprep.subr.mxu0 %v3520_v26 }
 0xc4f   :  { %3380 = vmatpush3.msra.mxu0 %v2593_v13 }
 0xc50   :  { %3381 = vmatprep.subr.mxu0 %v3520_v26 }
 0xc51   :  { %3382 = vmatpush3.msra.mxu0 %v2592_v32 }
 0xd0a   :  { %v2448_v27 = vpop.f32.mrf.mxu0 }
 0xd0b   :  { %v2522_v28 = vadd.f32 %v2521_v3, %v2448_v27 }
 0xd0c   :  { %v3363_v20 = vpop.f32.mrf.mxu0 }
 0xd0d   :  { %v2525_v47 = vadd.f32 %v4289_v52, %v2522_v28  ;;  %v2590_v52 = vld [vmem:[%s4497_s1] sm:$0xf] }
 0xd0e   :  { %v2978_v54 = vadd.f32 -1.0, %v2590_v52 }
 0xd0f   :  { %3499 = vtanh.f32 %v2525_v47  ;;  %v2974_v49 = vmul.f32 -1.442695, %v2525_v47 }
 0xd10   :  { %v2685_v56 = vmul.f32 1e+09, %v2978_v54 }
 0xd11   :  { %3501 = vpow2.f32 %v2974_v49 }
 0xd1c   :  { %v3500_v31 = vpop.eup %3499 }
 0xd1d   :  { %2535 = vrot.lane.b32.xlu0 %v3500_v31, %s3522_s30 }
 0xd1e   :  { %v3502_v48 = vpop.eup %3501 }
 0xd1f   :  { %v2529_v53 = vadd.f32 1.0, %v3502_v48 }
 0xd21   :  { %3503 = vrcp.f32 %v2529_v53 }
 0xd2e   :  { %v3504_v42 = vpop.eup %3503 }
 0xd2f   :  { %v2533_v41 = vmul.f32 %v3504_v42, %v2256_v50  ;;  %v2760_v50 = vld [vmem:[%s4499_s13] sm:$0xff] }
 0xd8f   :  { %v2536_v40 = vpop.permute.xlu0 %2535 }
 0xd90   :  { %v2538_v63 = vmul.f32 %v3504_v42, %v2536_v40 }
 0xd92   :  { %2540 = vrot.lane.b32.xlu1 %v2538_v63, %s3523_s5 }
 0xe04   :  { %v2541_v35 = vpop.permute.xlu1 %2540 }
 0xe05   :  { %v2543_v16 = vadd.f32 %v2541_v35, %v2533_v41 }
 0xe07   :  { %3505 = vtanh.f32 %v2543_v16 }
 0xe14   :  { %v3506_v55 = vpop.eup %3505 }
 0xe15   :  { %2546 = vrot.lane.b32.xlu0 %v3506_v55, %s3522_s30 }
 0xe19   :  { %2689 = vperm.xlu0 %3403, %v2685_v56  }
 0xe87   :  { %v2547_v33 = vpop.permute.xlu0 %2546 }
 0xe88   :  { %v2549_v34 = vmul.f32 %v3504_v42, %v2547_v33 }
 0xe8a   :  { %v2560_v43 = vrot.slane %v2549_v34, %v4353_v36 }
 0xe8c   :  { %v2561_v14 = vcombine.high %v2560_v43, %v2560_v43  ;;  %v2568_v45 = vrot.slane %v2560_v43, %v4353_v36 }
 0xe8e   :  { %v2575_v61 = vrot.slane %v2561_v14, %v4353_v36  ;;  %v2579_v58 = vrot.slane %v2568_v45, %v4364_v37 }
 0xe90   :  { %v2583_v46 = vrot.slane %v2575_v61, %v4364_v37  ;;  %v2586_v21 = vmul.f32 %v2975_v59, %v2579_v58  ;;  %v2763_v37 = vld [vmem:[%s4499_s13 + $0x18] sm:$0xff] }
 0xe91   :  { %3387 = vmatpush3.msra.mxu1 %v2763_v37 }
 0xe92   :  { %v2588_v57 = vadd.f32 %v2586_v21, %v2301_v24  ;;  %v2587_v60 = vmul.f32 %v2975_v59, %v2583_v46  ;;  %3388 = vmatprep.subr.mxu1 %v3520_v26 }
 0xe93   :  { %3389 = vmatpush3.msra.mxu1 %v2762_v1 }
 0xe94   :  { %2738 = vrot.lane.b32.xlu0 %v2588_v57, %s3523_s5  ;;  %v2589_v30 = vadd.f32 %v2587_v60, %v2302_v19  ;;  %3390 = vmatprep.subr.mxu1 %v3520_v26  ;;  %v2690_v38 = vpop.permute.xlu0 %2689 }
 0xe95   :  { %3391 = vmatpush3.msra.mxu1 %v2761_v17 }
 0xe96   :  { %v2605_v39 = vcombine.low %v2588_v57, %v2589_v30  ;;  %3392 = vmatprep.subr.mxu1 %v3520_v26 }
 0xe97   :  { %3393 = vmatpush3.msra.mxu1 %v2760_v50 }
 0xe98   :  { %2606 = vrot.lane.b32.xlu1 %v2605_v39, %s3523_s5 }
 0xe9c   :  { %2694 = vperm.xlu1 %3404, %v2686_v62  }
 0xea0   :  { %2740 = vrot.lane.b32.xlu1 %v2589_v30, %s3523_s5 }
 0xf06   :  { %v2739_v59 = vpop.permute.xlu0 %2738 }
 0xf0a   :  { %v2607_v36 = vpop.permute.xlu1 %2606 }
 0xf0b   :  { %3384 = vmatmul.mubr.msk.f32.vlgmr.msra.gmra.mxu0 %vm962_vm5, %v2607_v36 }
 0xf17   :  { %v2695_v2 = vpop.permute.xlu1 %2694 }
 0xf1b   :  { %v2741_v46 = vpop.permute.xlu1 %2740 }
 0xfcb   :  { %v2676_v4 = vpop.f32.mrf.mxu0 }
 0xfcc   :  { %v2677_v22 = vadd.f32 %v2976_v9, %v2676_v4 }
 0xfcd   :  { %v3385_v7 = vpop.f32.mrf.mxu0 }
 0xfce   :  { %v2681_v5 = vcombine.high %v2677_v22, %v2677_v22  ;;  %v2697_v0 = vadd.f32 %v2690_v38, %v2677_v22  ;;  %v2980_v22 = vld [vmem:[#allocation2] ss:$0 sm:$0xff] }
 0xfd0   :  { %v2698_v12 = vadd.f32 %v2695_v2, %v2681_v5  ;;  %v2700_v26 = vsel %vm2699_vm3, %v2697_v0, -inf }
 0xfd1   :  { %v2701_v10 = vrot.slane %v2700_v26, 4 }
 0xfd2   :  { %v2707_v44 = vsel %vm2699_vm3, %v2698_v12, -inf }
 0xfd3   :  { %v2702_v18 = vmax.f32 %v2700_v26, %v2701_v10  ;;  %v2708_v24 = vrot.slane %v2707_v44, 4 }
 0xfd5   :  { %v2703_v29 = vrot.slane %v2702_v18, 2  ;;  %v2709_v19 = vmax.f32 %v2707_v44, %v2708_v24 }
 0xfd7   :  { %v2704_v23 = vmax.f32 %v2702_v18, %v2703_v29  ;;  %v2710_v3 = vrot.slane %v2709_v19, 2 }
 0xfd9   :  { %v2705_v25 = vrot.slane %v2704_v23, 1  ;;  %v2711_v27 = vmax.f32 %v2709_v19, %v2710_v3 }
 0xfdb   :  { %v2706_v28 = vmax.f32 %v2704_v23, %v2705_v25  ;;  %v2712_v20 = vrot.slane %v2711_v27, 1 }
 0xfdd   :  { %v2713_v47 = vmax.f32 %v2711_v27, %v2712_v20  ;;  %v2714_v31 = vsub.f32 %v2697_v0, %v2706_v28 }
 0xfdf   :  { %v2715_v49 = vsub.f32 %v2698_v12, %v2713_v47  ;;  %v2716_v48 = vmul.f32 1.442695, %v2714_v31 }
 0xfe1   :  { %3507 = vpow2.f32 %v2716_v48  ;;  %v2718_v53 = vmul.f32 1.442695, %v2715_v49 }
 0xfe3   :  { %3509 = vpow2.f32 %v2718_v53 }
 0xfee   :  { %v3508_v42 = vpop.eup %3507 }
 0xfef   :  { %v2720_v40 = vsel %vm2699_vm3, %v3508_v42, 0.0 }
 0xff0   :  { %v3510_v63 = vpop.eup %3509  ;;  %v2721_v41 = vrot.slane %v2720_v40, 4 }
 0xff1   :  { %v2727_v35 = vsel %vm2699_vm3, %v3510_v63, 0.0 }
 0xff2   :  { %v2722_v16 = vadd.f32 %v2721_v41, %v2720_v40  ;;  %v2728_v52 = vrot.slane %v2727_v35, 4 }
 0xff4   :  { %v2723_v54 = vrot.slane %v2722_v16, 2  ;;  %v2729_v55 = vadd.f32 %v2728_v52, %v2727_v35 }
 0xff6   :  { %v2724_v56 = vadd.f32 %v2723_v54, %v2722_v16  ;;  %v2730_v6 = vrot.slane %v2729_v55, 2 }
 0xff8   :  { %v2725_v8 = vrot.slane %v2724_v56, 1  ;;  %v2731_v13 = vadd.f32 %v2730_v6, %v2729_v55 }
 0xffa   :  { %v2726_v32 = vadd.f32 %v2725_v8, %v2724_v56  ;;  %v2732_v33 = vrot.slane %v2731_v13, 1 }
 0xffc   :  { %v2733_v34 = vadd.f32 %v2732_v33, %v2731_v13  ;;  %3511 = vrcp.f32 %v2726_v32 }
 0xffe   :  { %3513 = vrcp.f32 %v2733_v34 }
0x1009   :  { %v3512_v43 = vpop.eup %3511 }
0x100a   :  { %v2735_v14 = vmul.f32 %v3512_v43, %v3508_v42 }
0x100b   :  { %v3514_v45 = vpop.eup %3513 }
0x100c   :  { %v2737_v61 = vmul.f32 %v3514_v45, %v3510_v63  ;;  %v2744_v58 = vmul.f32 %v2739_v59, %v2735_v14 }
0x100e   :  { %v2745_v21 = vmul.f32 %v2741_v46, %v2737_v61  ;;  %v2746_v11 = vsel %vm2699_vm3, %v2744_v58, 0.0 }
0x100f   :  { %v2747_v57 = vrot.slane %v2746_v11, 4 }
0x1010   :  { %v2753_v60 = vsel %vm2699_vm3, %v2745_v21, 0.0 }
0x1011   :  { %v2748_v30 = vadd.f32 %v2747_v57, %v2746_v11  ;;  %v2754_v15 = vrot.slane %v2753_v60, 4 }
0x1013   :  { %v2749_v39 = vrot.slane %v2748_v30, 2  ;;  %v2755_v62 = vadd.f32 %v2754_v15, %v2753_v60 }
0x1015   :  { %v2750_v36 = vadd.f32 %v2749_v39, %v2748_v30  ;;  %v2756_v37 = vrot.slane %v2755_v62, 2 }
0x1017   :  { %v2751_v1 = vrot.slane %v2750_v36, 1  ;;  %v2757_v17 = vadd.f32 %v2756_v37, %v2755_v62 }
0x1019   :  { %v2758_v50 = vrot.slane %v2757_v17, 1  ;;  %v2752_v51 = vadd.f32 %v2751_v1, %v2750_v36 }
0x101b   :  { %v2759_v9 = vadd.f32 %v2758_v50, %v2757_v17 }
0x101d   :  { %v2773_v4 = vsel %vm1414_vm7, %v2759_v9, %v2752_v51 }
0x101e   :  { %3395 = vmatmul.mubr.msk.f32.vlgmr.msra.gmra.mxu1 %vm962_vm5, %v2773_v4 }
0x10de   :  { %v2842_v38 = vpop.f32.mrf.mxu1 }
0x10df   :  { %v2843_v7 = vadd.f32 %v2980_v22, %v2842_v38 }
0x10e0   :  { %v3396_v5 = vpop.f32.mrf.mxu1 }
0x10e1   :  { %v2982_v0 = vmul.f32 -1.442695, %v2843_v7 }
0x10e3   :  { %3515 = vpow2.f32 %v2982_v0 }
0x10f0   :  { %v3516_v2 = vpop.eup %3515 }
0x10f1   :  { %v2849_v12 = vadd.f32 1.0, %v3516_v2 }
0x10f3   :  { %3517 = vrcp.f32 %v2849_v12 }
0x1100   :  { %v3518_v26 = vpop.eup %3517 }
0x1101   :  { %2853 = vst.msk [vmem:[%s4502_s15] sm:$0x3] %vm2852_vm4, %v3518_v26 }

</bundles_post_ra>
